<compile_context>
chip_gen: v6e
topology: v6e:2x2x1
jax: 0.10.0
libtpu: 0.0.40
codegen_flags: <defaults>
</compile_context>

<pallas_src>
import math
import jax
import jax.numpy as jnp
from jax.experimental import pallas as pl
from jax.experimental.pallas import tpu as pltpu


WEIGHT_NAMES = ["wqkv1", "wo1", "wq2", "wkv2", "wo2", "w1f", "w2f"]


# ----------------------------------------------------------------------------
# Generation-aware defaults
# ----------------------------------------------------------------------------
def _tpu_vmem_capacity_bytes():
    try:
        return int(pltpu.get_tpu_info().vmem_capacity_bytes)
    except Exception:
        return 128 * 1024 * 1024


def _default_vmem_limit():
    cap = _tpu_vmem_capacity_bytes()
    # Leave headroom: ~38 MiB on v7x (64 MiB physical), ~77 MiB on v5e/v6e.
    return min(int(cap * 0.6), 100 * 1024 * 1024)


def _num_tensorcores():
    try:
        info = pltpu.get_tpu_info()
        for attr in ("num_cores", "core_count", "num_tensorcores"):
            v = getattr(info, attr, None)
            if v:
                return int(v)
    except Exception:
        pass
    return 1


def _default_batch_tile(B):
    nc = _num_tensorcores()
    if nc > 1:
        # Multi-TC chip (v7x): give every TensorCore at least one batch tile.
        target = max(1, (B + nc - 1) // nc)
        for bt in range(target, 0, -1):
            if B % bt == 0:
                return bt
    # Single-TC chips (v5e/v6e): biggest tile amortizes weight streaming.
    return B


# ----------------------------------------------------------------------------
# Kernel
# ----------------------------------------------------------------------------
def make_decoder_kernel(h, d_model, d_K, d_V, d_ff, bt, S_in, S_out,
                        compute_dtype, vec_layout):
    """Fused n-layer decoder kernel for fixed sizes. Grid = (batch_tile, layer)."""
    cd = compute_dtype
    hdk, hdv = h * d_K, h * d_V

    def layer_norm(v, g, b):
        # v: (rows, d_model) f32 ; g, b: (1, d_model) f32
        mu = jnp.mean(v, axis=-1, keepdims=True)
        var = jnp.mean(jnp.square(v - mu), axis=-1, keepdims=True)
        return (v - mu) * jax.lax.rsqrt(var + 1e-5) * g + b

    def split_heads(M, S, dh):
        # (bt*S, h*dh) -> (bt*h, S, dh): cheap leading-dim reshape, h lane
        # slices, one stack along a leading axis, leading-dim merge.
        M3 = M.reshape(bt, S, h * dh)
        Mh = jnp.stack([M3[:, :, i * dh:(i + 1) * dh] for i in range(h)], axis=1)
        return Mh.reshape(bt * h, S, dh)

    def merge_heads(o, Sq):
        # (bt*h, Sq, d_V) -> (bt*Sq, h*d_V): leading split, single lane concat.
        o4 = o.reshape(bt, h, Sq, d_V)
        o3 = jnp.concatenate([o4[:, i] for i in range(h)], axis=-1)
        return o3.reshape(bt * Sq, h * d_V)

    def attend(Q, K, V, Sq, Sk, mask_add):
        # Q pre-scaled by 1/sqrt(d_K) (folded into wq/bq at pack time).
        Qh = split_heads(Q, Sq, d_K).astype(cd)
        Kh = split_heads(K, Sk, d_K).astype(cd)
        Vh = split_heads(V, Sk, d_V).astype(cd)
        s = jnp.einsum("bqd,bkd->bqk", Qh, Kh,
                       preferred_element_type=jnp.float32)   # (bt*h, Sq, Sk)
        if mask_add is not None:
            s = s + mask_add[None, :, :]
        s = s - jnp.max(s, axis=-1, keepdims=True)
        p = jnp.exp(s)
        p = p * pl.reciprocal(jnp.sum(p, axis=-1, keepdims=True), approx=True)
        o = jnp.einsum("bqk,bkd->bqd", p.astype(cd), Vh,
                       preferred_element_type=jnp.float32)   # (bt*h, Sq, d_V)
        return merge_heads(o, Sq)

    def kernel(mem_ref, seq_ref,
               wqkv1_ref, wo1_ref, wq2_ref, wkv2_ref, wo2_ref, w1f_ref, w2f_ref,
               vec_ref, out_ref, mask_sc):
        l = pl.program_id(1)

        @pl.when(l == 0)
        def _():
            # Seed the resident activation carry + build causal mask once.
            out_ref[...] = seq_ref[...].astype(out_ref.dtype)
            qi = jax.lax.broadcasted_iota(jnp.int32, (S_out, S_out), 0)
            ki = jax.lax.broadcasted_iota(jnp.int32, (S_out, S_out), 1)
            mask_sc[...] = jnp.where(ki > qi, jnp.float32(-1e9), jnp.float32(0.0))

        x = out_ref[...].reshape(bt * S_out, d_model)       # f32 carry (prev layer)
        mem = mem_ref[...].reshape(bt * S_in, d_model)      # bf16 encoder memory

        vecs = vec_ref[0]                                   # (P, d_max) f32

        def vec(name):
            row, dim = vec_layout[name]
            return vecs[row:row + 1, :dim]                  # (1, dim)

        # --- masked self attention + residual + LN --------------------------
        qkv = jnp.dot(x.astype(cd), wqkv1_ref[0],
                      preferred_element_type=jnp.float32) + vec("bqkv1")
        o1 = attend(qkv[:, :hdk], qkv[:, hdk:2 * hdk], qkv[:, 2 * hdk:],
                    S_out, S_out, mask_sc[...])
        a1 = jnp.dot(o1.astype(cd), wo1_ref[0],
                     preferred_element_type=jnp.float32) + vec("bo1")
        a1 = layer_norm(x + a1, vec("g1"), vec("be1"))

        # --- cross attention on encoder memory + residual + LN --------------
        q2 = jnp.dot(a1.astype(cd), wq2_ref[0],
                     preferred_element_type=jnp.float32) + vec("bq2")
        kv2 = jnp.dot(mem, wkv2_ref[0],
                      preferred_element_type=jnp.float32) + vec("bkv2")
        o2 = attend(q2, kv2[:, :hdk], kv2[:, hdk:], S_out, S_in, None)
        a2 = jnp.dot(o2.astype(cd), wo2_ref[0],
                     preferred_element_type=jnp.float32) + vec("bo2")
        a2 = layer_norm(a1 + a2, vec("g2"), vec("be2"))

        # --- feed-forward (Linear -> ReLU -> Linear) + residual + LN --------
        hid = jnp.maximum(
            jnp.dot(a2.astype(cd), w1f_ref[0],
                    preferred_element_type=jnp.float32) + vec("b1f"),
            0.0).astype(cd)                                  # keep hidden in bf16
        a3 = jnp.dot(hid, w2f_ref[0],
                     preferred_element_type=jnp.float32) + vec("b2f")
        a3 = layer_norm(a2 + a3, vec("g3"), vec("be3"))

        out_ref[...] = a3.reshape(bt, S_out, d_model).astype(out_ref.dtype)

    return kernel


# ----------------------------------------------------------------------------
# Host-side parameter packing (QKV fusion, scale folding, bias/LN vector pack)
# ----------------------------------------------------------------------------
def pack_params(layer_params, h, d_K, d_V, d_model, d_ff, compute_dtype):
    hdk, hdv = h * d_K, h * d_V
    scale = 1.0 / math.sqrt(d_K)

    vec_specs = [
        ("bqkv1", 2 * hdk + hdv), ("bo1", d_model), ("g1", d_model), ("be1", d_model),
        ("bq2", hdk), ("bkv2", hdk + hdv), ("bo2", d_model), ("g2", d_model),
        ("be2", d_model), ("b1f", d_ff), ("b2f", d_model), ("g3", d_model),
        ("be3", d_model),
    ]
    d_max = max(d for _, d in vec_specs)
    vec_layout = {name: (row, dim) for row, (name, dim) in enumerate(vec_specs)}

    w_stacks = {k: [] for k in WEIGHT_NAMES}
    vec_stack = []
    for p in layer_params:
        # 1/sqrt(d_K) folded into the Q projection (weight AND bias).
        w_stacks["wqkv1"].append(
            jnp.concatenate([p["wq1"] * scale, p["wk1"], p["wv1"]], axis=1))
        w_stacks["wo1"].append(p["wo1"])
        w_stacks["wq2"].append(p["wq2"] * scale)
        w_stacks["wkv2"].append(jnp.concatenate([p["wk2"], p["wv2"]], axis=1))
        w_stacks["wo2"].append(p["wo2"])
        w_stacks["w1f"].append(p["w1f"])
        w_stacks["w2f"].append(p["w2f"])

        per_layer = {
            "bqkv1": jnp.concatenate([p["bq1"] * scale, p["bk1"], p["bv1"]], axis=1),
            "bo1": p["bo1"], "g1": p["g1"], "be1": p["be1"],
            "bq2": p["bq2"] * scale,
            "bkv2": jnp.concatenate([p["bk2"], p["bv2"]], axis=1),
            "bo2": p["bo2"], "g2": p["g2"], "be2": p["be2"],
            "b1f": p["b1f"], "b2f": p["b2f"], "g3": p["g3"], "be3": p["be3"],
        }
        rows = [jnp.pad(per_layer[name], ((0, 0), (0, d_max - dim)))
                for name, dim in vec_specs]
        vec_stack.append(jnp.concatenate(rows, axis=0))       # (P, d_max)

    weights = [jnp.stack(w_stacks[k], axis=0).astype(compute_dtype)
               for k in WEIGHT_NAMES]                          # bf16 weights
    vecs = jnp.stack(vec_stack, axis=0).astype(jnp.float32)   # (n, P, d_max) f32
    return weights, vecs, vec_layout


# ----------------------------------------------------------------------------
# Wrapper: one fused pallas_call for the full layer stack
# ----------------------------------------------------------------------------
def decoder_forward(memory, seq, layer_params, h, d_K, d_V, *,
                    batch_tile=None, compute_dtype=jnp.bfloat16,
                    vmem_limit_bytes=None):
    B, S_in, D = memory.shape
    _, S_out, _ = seq.shape
    n_layers = len(layer_params)
    d_ff = layer_params[0]["w1f"].shape[-1]

    bt = _default_batch_tile(B) if batch_tile is None else batch_tile
    assert B % bt == 0, "batch_tile must divide batch"
    if vmem_limit_bytes is None:
        vmem_limit_bytes = _default_vmem_limit()

    weights, vecs, vec_layout = pack_params(
        layer_params, h, d_K, d_V, D, d_ff, compute_dtype)

    kernel = make_decoder_kernel(h, D, d_K, d_V, d_ff, bt, S_in, S_out,
                                 compute_dtype, vec_layout)

    act_map = lambda b, l: (b, 0, 0)      # activations: per batch tile
    lyr_map = lambda b, l: (l, 0, 0)      # params: streamed per layer step

    in_specs = ([pl.BlockSpec((bt, S_in, D), act_map),
                 pl.BlockSpec((bt, S_out, D), act_map)]
                + [pl.BlockSpec((1,) + tuple(w.shape[1:]), lyr_map) for w in weights]
                + [pl.BlockSpec((1,) + tuple(vecs.shape[1:]), lyr_map)])

    return pl.pallas_call(
        kernel,
        out_shape=jax.ShapeDtypeStruct((B, S_out, D), jnp.float32),
        grid=(B // bt, n_layers),
        in_specs=in_specs,
        out_specs=pl.BlockSpec((bt, S_out, D), act_map),
        scratch_shapes=[pltpu.VMEM((S_out, S_out), jnp.float32)],   # causal mask
        compiler_params=pltpu.CompilerParams(
            dimension_semantics=("parallel", "arbitrary"),
            vmem_limit_bytes=vmem_limit_bytes),
    )(memory.astype(compute_dtype), seq, *weights, vecs)


# ----------------------------------------------------------------------------
# Deterministic parameter init (mirrors DecoderUnit.__init__ shapes)
# ----------------------------------------------------------------------------
def init_decoder_params(key, n, h, d_model, d_K, d_V, d_ff):
    def nrm(k, shape):
        return (0.02 * jax.random.normal(k, shape)).astype(jnp.float32)

    layers = []
    for _ in range(n):
        key, *ks = jax.random.split(key, 21)
        p = {
            # attn1 (masked self attention)
            "wq1": nrm(ks[0], (d_model, h * d_K)),
            "wk1": nrm(ks[1], (d_model, h * d_K)),
            "wv1": nrm(ks[2], (d_model, h * d_V)),
            "wo1": nrm(ks[3], (h * d_V, d_model)),
            "bq1": nrm(ks[4], (1, h * d_K)),
            "bk1": nrm(ks[5], (1, h * d_K)),
            "bv1": nrm(ks[6], (1, h * d_V)),
            "bo1": nrm(ks[7], (1, d_model)),
            "g1": jnp.ones((1, d_model), jnp.float32),
            "be1": jnp.zeros((1, d_model), jnp.float32),
            # attn2 (cross attention on memory)
            "wq2": nrm(ks[8], (d_model, h * d_K)),
            "wk2": nrm(ks[9], (d_model, h * d_K)),
            "wv2": nrm(ks[10], (d_model, h * d_V)),
            "wo2": nrm(ks[11], (h * d_V, d_model)),
            "bq2": nrm(ks[12], (1, h * d_K)),
            "bk2": nrm(ks[13], (1, h * d_K)),
            "bv2": nrm(ks[14], (1, h * d_V)),
            "bo2": nrm(ks[15], (1, d_model)),
            "g2": jnp.ones((1, d_model), jnp.float32),
            "be2": jnp.zeros((1, d_model), jnp.float32),
            # feed-forward network
            "w1f": nrm(ks[16], (d_model, d_ff)),
            "b1f": nrm(ks[17], (1, d_ff)),
            "w2f": nrm(ks[18], (d_ff, d_model)),
            "b2f": nrm(ks[19], (1, d_model)),
            "g3": jnp.ones((1, d_model), jnp.float32),
            "be3": jnp.zeros((1, d_model), jnp.float32),
        }
        layers.append(p)
    return layers


# ----------------------------------------------------------------------------
# Main
# ----------------------------------------------------------------------------
if __name__ == "__main__":
    # small, forward-consistent shapes
    n_layers, h = 2, 4
    d_model, d_K, d_V, d_ff = 32, 8, 8, 64
    B, S_in, S_out = 2, 8, 8

    root = jax.random.PRNGKey(0)
    k_mem, k_seq, k_par = jax.random.split(root, 3)

    memory = jax.random.normal(k_mem, (B, S_in, d_model), jnp.float32)
    seq = jax.random.normal(k_seq, (B, S_out, d_model), jnp.float32)
    layer_params = init_decoder_params(k_par, n_layers, h, d_model, d_K, d_V, d_ff)

    out = decoder_forward(memory, seq, layer_params, h, d_K, d_V)
    out = jax.block_until_ready(out)

    assert out.shape == (B, S_out, d_model)
    assert bool(jnp.all(jnp.isfinite(out)))
    print("KERNEL_OK")
</pallas_src>

<mosaic_0001>
module attributes {stable_mosaic.version = 11 : i64} {
  func.func @kernel(%arg0: i32, %arg1: i32, %arg2: memref<2x8x32xbf16, #tpu.memory_space<vmem>>, %arg3: memref<2x8x32xf32, #tpu.memory_space<vmem>>, %arg4: memref<1x32x96xbf16, #tpu.memory_space<vmem>>, %arg5: memref<1x32x32xbf16, #tpu.memory_space<vmem>>, %arg6: memref<1x32x32xbf16, #tpu.memory_space<vmem>>, %arg7: memref<1x32x64xbf16, #tpu.memory_space<vmem>>, %arg8: memref<1x32x32xbf16, #tpu.memory_space<vmem>>, %arg9: memref<1x32x64xbf16, #tpu.memory_space<vmem>>, %arg10: memref<1x64x32xbf16, #tpu.memory_space<vmem>>, %arg11: memref<1x13x96xf32, #tpu.memory_space<vmem>>, %arg12: memref<2x8x32xf32, #tpu.memory_space<vmem>>, %arg13: memref<8x8xf32, #tpu.memory_space<vmem>>) attributes {dimension_semantics = [#tpu.dimension_semantics<parallel>, #tpu.dimension_semantics<arbitrary>], iteration_bounds = array<i64: 1, 2>, scalar_prefetch = 0 : i64, scratch_operands = 1 : i64, tpu.core_type = #tpu.core_type<tc>, window_params = [{transform_indices = @transform_0, window_bounds = array<i64: 2, 8, 32>}, {transform_indices = @transform_1, window_bounds = array<i64: 2, 8, 32>}, {transform_indices = @transform_2, window_bounds = array<i64: 1, 32, 96>}, {transform_indices = @transform_3, window_bounds = array<i64: 1, 32, 32>}, {transform_indices = @transform_4, window_bounds = array<i64: 1, 32, 32>}, {transform_indices = @transform_5, window_bounds = array<i64: 1, 32, 64>}, {transform_indices = @transform_6, window_bounds = array<i64: 1, 32, 32>}, {transform_indices = @transform_7, window_bounds = array<i64: 1, 32, 64>}, {transform_indices = @transform_8, window_bounds = array<i64: 1, 64, 32>}, {transform_indices = @transform_9, window_bounds = array<i64: 1, 13, 96>}, {transform_indices = @transform_10, window_bounds = array<i64: 2, 8, 32>}]} {
    %c0_i32 = arith.constant 0 : i32
    %0 = arith.cmpi eq, %arg1, %c0_i32 : i32
    %1 = arith.extui %0 : i1 to i32
    %c0_i32_0 = arith.constant 0 : i32
    %2 = arith.cmpi ne, %1, %c0_i32_0 : i32
    scf.if %2 {
      %c0_65 = arith.constant 0 : index
      %c0_66 = arith.constant 0 : index
      %c0_67 = arith.constant 0 : index
      %265 = vector.load %arg3[%c0_65, %c0_66, %c0_67] : memref<2x8x32xf32, #tpu.memory_space<vmem>>, vector<2x8x32xf32>
      %c0_68 = arith.constant 0 : index
      %c0_69 = arith.constant 0 : index
      %c0_70 = arith.constant 0 : index
      %266 = vector.load %arg12[%c0_68, %c0_69, %c0_70] : memref<2x8x32xf32, #tpu.memory_space<vmem>>, vector<2x8x32xf32>
      tpu.vector_store %arg12[%c0_68, %c0_69, %c0_70], %265 {strides = array<i32>} : memref<2x8x32xf32, #tpu.memory_space<vmem>>, vector<2x8x32xf32>,
      %267 = tpu.iota {dimensions = array<i32: 0>} : vector<8x8xi32>
      %268 = tpu.iota {dimensions = array<i32: 1>} : vector<8x8xi32>
      %269 = arith.cmpi sgt, %268, %267 : vector<8x8xi32>
      %cst_71 = arith.constant -1.000000e+09 : f32
      %cst_72 = arith.constant 0.000000e+00 : f32
      %270 = vector.broadcast %cst_71 : f32 to vector<8x8xf32>
      %271 = vector.broadcast %cst_72 : f32 to vector<8x8xf32>
      %272 = arith.select %269, %270, %271 : vector<8x8xi1>, vector<8x8xf32>
      %c0_73 = arith.constant 0 : index
      %c0_74 = arith.constant 0 : index
      %273 = vector.load %arg13[%c0_73, %c0_74] : memref<8x8xf32, #tpu.memory_space<vmem>>, vector<8x8xf32>
      tpu.vector_store %arg13[%c0_73, %c0_74], %272 {strides = array<i32>} : memref<8x8xf32, #tpu.memory_space<vmem>>, vector<8x8xf32>,
    } else {
    }
    %c0 = arith.constant 0 : index
    %c0_1 = arith.constant 0 : index
    %c0_2 = arith.constant 0 : index
    %3 = vector.load %arg12[%c0, %c0_1, %c0_2] : memref<2x8x32xf32, #tpu.memory_space<vmem>>, vector<2x8x32xf32>
    %4 = vector.shape_cast %3 : vector<2x8x32xf32> to vector<16x32xf32>
    %c0_3 = arith.constant 0 : index
    %c0_4 = arith.constant 0 : index
    %c0_5 = arith.constant 0 : index
    %5 = vector.load %arg2[%c0_3, %c0_4, %c0_5] : memref<2x8x32xbf16, #tpu.memory_space<vmem>>, vector<2x8x32xbf16>
    %6 = vector.shape_cast %5 : vector<2x8x32xbf16> to vector<16x32xbf16>
    %c0_6 = arith.constant 0 : index
    %c0_7 = arith.constant 0 : index
    %c0_8 = arith.constant 0 : index
    %7 = vector.load %arg11[%c0_6, %c0_7, %c0_8] : memref<1x13x96xf32, #tpu.memory_space<vmem>>, vector<1x13x96xf32>
    %8 = vector.shape_cast %7 : vector<1x13x96xf32> to vector<13x96xf32>
    %9 = arith.truncf %4 : vector<16x32xf32> to vector<16x32xbf16>
    %c0_9 = arith.constant 0 : index
    %c0_10 = arith.constant 0 : index
    %c0_11 = arith.constant 0 : index
    %10 = vector.load %arg4[%c0_9, %c0_10, %c0_11] : memref<1x32x96xbf16, #tpu.memory_space<vmem>>, vector<1x32x96xbf16>
    %11 = vector.shape_cast %10 : vector<1x32x96xbf16> to vector<32x96xbf16>
    %cst = arith.constant dense<0.000000e+00> : vector<16x96xf32>
    %12 = tpu.matmul %9, %11, %cst {dimension_numbers = #tpu.dot_dimension_numbers<[1], [0], [0], [1], [0, 0, 1, 1], [], []>} : vector<16x32xbf16>, vector<32x96xbf16>, vector<16x96xf32> -> vector<16x96xf32>
    %13 = vector.extract_strided_slice %8 {offsets = [0, 0], sizes = [1, 96], strides = [1, 1]} : vector<13x96xf32> to vector<1x96xf32>
    %14 = vector.broadcast %13 : vector<1x96xf32> to vector<16x96xf32>
    %15 = arith.addf %12, %14 : vector<16x96xf32>
    %16 = vector.extract_strided_slice %15 {offsets = [0, 0], sizes = [16, 32], strides = [1, 1]} : vector<16x96xf32> to vector<16x32xf32>
    %17 = vector.extract_strided_slice %15 {offsets = [0, 32], sizes = [16, 32], strides = [1, 1]} : vector<16x96xf32> to vector<16x32xf32>
    %18 = vector.extract_strided_slice %15 {offsets = [0, 64], sizes = [16, 32], strides = [1, 1]} : vector<16x96xf32> to vector<16x32xf32>
    %c0_12 = arith.constant 0 : index
    %c0_13 = arith.constant 0 : index
    %19 = vector.load %arg13[%c0_12, %c0_13] : memref<8x8xf32, #tpu.memory_space<vmem>>, vector<8x8xf32>
    %20 = vector.shape_cast %16 : vector<16x32xf32> to vector<2x8x32xf32>
    %21 = vector.extract_strided_slice %20 {offsets = [0, 0, 0], sizes = [2, 8, 8], strides = [1, 1, 1]} : vector<2x8x32xf32> to vector<2x8x8xf32>
    %22 = vector.extract_strided_slice %20 {offsets = [0, 0, 8], sizes = [2, 8, 8], strides = [1, 1, 1]} : vector<2x8x32xf32> to vector<2x8x8xf32>
    %23 = vector.extract_strided_slice %20 {offsets = [0, 0, 16], sizes = [2, 8, 8], strides = [1, 1, 1]} : vector<2x8x32xf32> to vector<2x8x8xf32>
    %24 = vector.extract_strided_slice %20 {offsets = [0, 0, 24], sizes = [2, 8, 8], strides = [1, 1, 1]} : vector<2x8x32xf32> to vector<2x8x8xf32>
    %25 = vector.shape_cast %21 : vector<2x8x8xf32> to vector<2x1x8x8xf32>
    %26 = vector.shape_cast %22 : vector<2x8x8xf32> to vector<2x1x8x8xf32>
    %27 = vector.shape_cast %23 : vector<2x8x8xf32> to vector<2x1x8x8xf32>
    %28 = vector.shape_cast %24 : vector<2x8x8xf32> to vector<2x1x8x8xf32>
    %29 = tpu.concatenate %25, %26, %27, %28 in 1 : vector<2x1x8x8xf32>, vector<2x1x8x8xf32>, vector<2x1x8x8xf32>, vector<2x1x8x8xf32> -> vector<2x4x8x8xf32>
    %30 = vector.shape_cast %29 : vector<2x4x8x8xf32> to vector<8x8x8xf32>
    %31 = arith.truncf %30 : vector<8x8x8xf32> to vector<8x8x8xbf16>
    %32 = vector.shape_cast %17 : vector<16x32xf32> to vector<2x8x32xf32>
    %33 = vector.extract_strided_slice %32 {offsets = [0, 0, 0], sizes = [2, 8, 8], strides = [1, 1, 1]} : vector<2x8x32xf32> to vector<2x8x8xf32>
    %34 = vector.extract_strided_slice %32 {offsets = [0, 0, 8], sizes = [2, 8, 8], strides = [1, 1, 1]} : vector<2x8x32xf32> to vector<2x8x8xf32>
    %35 = vector.extract_strided_slice %32 {offsets = [0, 0, 16], sizes = [2, 8, 8], strides = [1, 1, 1]} : vector<2x8x32xf32> to vector<2x8x8xf32>
    %36 = vector.extract_strided_slice %32 {offsets = [0, 0, 24], sizes = [2, 8, 8], strides = [1, 1, 1]} : vector<2x8x32xf32> to vector<2x8x8xf32>
    %37 = vector.shape_cast %33 : vector<2x8x8xf32> to vector<2x1x8x8xf32>
    %38 = vector.shape_cast %34 : vector<2x8x8xf32> to vector<2x1x8x8xf32>
    %39 = vector.shape_cast %35 : vector<2x8x8xf32> to vector<2x1x8x8xf32>
    %40 = vector.shape_cast %36 : vector<2x8x8xf32> to vector<2x1x8x8xf32>
    %41 = tpu.concatenate %37, %38, %39, %40 in 1 : vector<2x1x8x8xf32>, vector<2x1x8x8xf32>, vector<2x1x8x8xf32>, vector<2x1x8x8xf32> -> vector<2x4x8x8xf32>
    %42 = vector.shape_cast %41 : vector<2x4x8x8xf32> to vector<8x8x8xf32>
    %43 = arith.truncf %42 : vector<8x8x8xf32> to vector<8x8x8xbf16>
    %44 = vector.shape_cast %18 : vector<16x32xf32> to vector<2x8x32xf32>
    %45 = vector.extract_strided_slice %44 {offsets = [0, 0, 0], sizes = [2, 8, 8], strides = [1, 1, 1]} : vector<2x8x32xf32> to vector<2x8x8xf32>
    %46 = vector.extract_strided_slice %44 {offsets = [0, 0, 8], sizes = [2, 8, 8], strides = [1, 1, 1]} : vector<2x8x32xf32> to vector<2x8x8xf32>
    %47 = vector.extract_strided_slice %44 {offsets = [0, 0, 16], sizes = [2, 8, 8], strides = [1, 1, 1]} : vector<2x8x32xf32> to vector<2x8x8xf32>
    %48 = vector.extract_strided_slice %44 {offsets = [0, 0, 24], sizes = [2, 8, 8], strides = [1, 1, 1]} : vector<2x8x32xf32> to vector<2x8x8xf32>
    %49 = vector.shape_cast %45 : vector<2x8x8xf32> to vector<2x1x8x8xf32>
    %50 = vector.shape_cast %46 : vector<2x8x8xf32> to vector<2x1x8x8xf32>
    %51 = vector.shape_cast %47 : vector<2x8x8xf32> to vector<2x1x8x8xf32>
    %52 = vector.shape_cast %48 : vector<2x8x8xf32> to vector<2x1x8x8xf32>
    %53 = tpu.concatenate %49, %50, %51, %52 in 1 : vector<2x1x8x8xf32>, vector<2x1x8x8xf32>, vector<2x1x8x8xf32>, vector<2x1x8x8xf32> -> vector<2x4x8x8xf32>
    %54 = vector.shape_cast %53 : vector<2x4x8x8xf32> to vector<8x8x8xf32>
    %55 = arith.truncf %54 : vector<8x8x8xf32> to vector<8x8x8xbf16>
    "tpu.trace_start"() <{level = 10 : i32, message = "bqd,bkd->bqk"}> : () -> ()
    %cst_14 = arith.constant dense<0.000000e+00> : vector<8x8x8xf32>
    %56 = tpu.matmul %31, %43, %cst_14 {dimension_numbers = #tpu.dot_dimension_numbers<[2], [2], [1], [1], [0, 0, 0, 1, 1, 1], [0], [0]>} : vector<8x8x8xbf16>, vector<8x8x8xbf16>, vector<8x8x8xf32> -> vector<8x8x8xf32>
    "tpu.trace_stop"() : () -> ()
    %57 = vector.shape_cast %19 : vector<8x8xf32> to vector<1x8x8xf32>
    %58 = vector.broadcast %57 : vector<1x8x8xf32> to vector<8x8x8xf32>
    %59 = arith.addf %56, %58 : vector<8x8x8xf32>
    %cst_15 = arith.constant dense<0xFF800000> : vector<8x8xf32>
    %60 = vector.multi_reduction <maximumf>, %59, %cst_15 [2] : vector<8x8x8xf32> to vector<8x8xf32>
    %61 = vector.shape_cast %60 : vector<8x8xf32> to vector<8x8x1xf32>
    %62 = vector.broadcast %61 : vector<8x8x1xf32> to vector<8x8x8xf32>
    %63 = arith.subf %59, %62 : vector<8x8x8xf32>
    %64 = math.exp %63 : vector<8x8x8xf32>
    %cst_16 = arith.constant dense<0.000000e+00> : vector<8x8xf32>
    %65 = vector.multi_reduction <add>, %64, %cst_16 [2] : vector<8x8x8xf32> to vector<8x8xf32>
    %66 = vector.shape_cast %65 : vector<8x8xf32> to vector<8x8x1xf32>
    %67 = tpu.reciprocal %66 {approx = true} : vector<8x8x1xf32> -> vector<8x8x1xf32>
    %68 = vector.broadcast %67 : vector<8x8x1xf32> to vector<8x8x8xf32>
    %69 = arith.mulf %64, %68 : vector<8x8x8xf32>
    %70 = arith.truncf %69 : vector<8x8x8xf32> to vector<8x8x8xbf16>
    "tpu.trace_start"() <{level = 10 : i32, message = "bqk,bkd->bqd"}> : () -> ()
    %cst_17 = arith.constant dense<0.000000e+00> : vector<8x8x8xf32>
    %71 = tpu.matmul %70, %55, %cst_17 {dimension_numbers = #tpu.dot_dimension_numbers<[2], [1], [1], [2], [0, 0, 0, 1, 1, 2], [0], [0]>} : vector<8x8x8xbf16>, vector<8x8x8xbf16>, vector<8x8x8xf32> -> vector<8x8x8xf32>
    "tpu.trace_stop"() : () -> ()
    %72 = vector.shape_cast %71 : vector<8x8x8xf32> to vector<2x4x8x8xf32>
    %73 = vector.extract_strided_slice %72 {offsets = [0, 0, 0, 0], sizes = [2, 1, 8, 8], strides = [1, 1, 1, 1]} : vector<2x4x8x8xf32> to vector<2x1x8x8xf32>
    %74 = vector.shape_cast %73 : vector<2x1x8x8xf32> to vector<2x8x8xf32>
    %75 = vector.extract_strided_slice %72 {offsets = [0, 1, 0, 0], sizes = [2, 1, 8, 8], strides = [1, 1, 1, 1]} : vector<2x4x8x8xf32> to vector<2x1x8x8xf32>
    %76 = vector.shape_cast %75 : vector<2x1x8x8xf32> to vector<2x8x8xf32>
    %77 = vector.extract_strided_slice %72 {offsets = [0, 2, 0, 0], sizes = [2, 1, 8, 8], strides = [1, 1, 1, 1]} : vector<2x4x8x8xf32> to vector<2x1x8x8xf32>
    %78 = vector.shape_cast %77 : vector<2x1x8x8xf32> to vector<2x8x8xf32>
    %79 = vector.extract_strided_slice %72 {offsets = [0, 3, 0, 0], sizes = [2, 1, 8, 8], strides = [1, 1, 1, 1]} : vector<2x4x8x8xf32> to vector<2x1x8x8xf32>
    %80 = vector.shape_cast %79 : vector<2x1x8x8xf32> to vector<2x8x8xf32>
    %81 = tpu.concatenate %74, %76, %78, %80 in 2 : vector<2x8x8xf32>, vector<2x8x8xf32>, vector<2x8x8xf32>, vector<2x8x8xf32> -> vector<2x8x32xf32>
    %82 = vector.shape_cast %81 : vector<2x8x32xf32> to vector<16x32xf32>
    %83 = arith.truncf %82 : vector<16x32xf32> to vector<16x32xbf16>
    %c0_18 = arith.constant 0 : index
    %c0_19 = arith.constant 0 : index
    %c0_20 = arith.constant 0 : index
    %84 = vector.load %arg5[%c0_18, %c0_19, %c0_20] : memref<1x32x32xbf16, #tpu.memory_space<vmem>>, vector<1x32x32xbf16>
    %85 = vector.shape_cast %84 : vector<1x32x32xbf16> to vector<32x32xbf16>
    %cst_21 = arith.constant dense<0.000000e+00> : vector<16x32xf32>
    %86 = tpu.matmul %83, %85, %cst_21 {dimension_numbers = #tpu.dot_dimension_numbers<[1], [0], [0], [1], [0, 0, 1, 1], [], []>} : vector<16x32xbf16>, vector<32x32xbf16>, vector<16x32xf32> -> vector<16x32xf32>
    %87 = vector.extract_strided_slice %8 {offsets = [1, 0], sizes = [1, 32], strides = [1, 1]} : vector<13x96xf32> to vector<1x32xf32>
    %88 = vector.broadcast %87 : vector<1x32xf32> to vector<16x32xf32>
    %89 = arith.addf %86, %88 : vector<16x32xf32>
    %90 = arith.addf %4, %89 : vector<16x32xf32>
    %91 = vector.extract_strided_slice %8 {offsets = [2, 0], sizes = [1, 32], strides = [1, 1]} : vector<13x96xf32> to vector<1x32xf32>
    %92 = vector.extract_strided_slice %8 {offsets = [3, 0], sizes = [1, 32], strides = [1, 1]} : vector<13x96xf32> to vector<1x32xf32>
    %cst_22 = arith.constant dense<0.000000e+00> : vector<16xf32>
    %93 = vector.multi_reduction <add>, %90, %cst_22 [1] : vector<16x32xf32> to vector<16xf32>
    %94 = vector.shape_cast %93 : vector<16xf32> to vector<16x1xf32>
    %cst_23 = arith.constant 3.200000e+01 : f32
    %95 = vector.broadcast %cst_23 : f32 to vector<16x1xf32>
    %96 = arith.divf %94, %95 : vector<16x1xf32>
    %97 = vector.broadcast %96 : vector<16x1xf32> to vector<16x32xf32>
    %98 = arith.subf %90, %97 : vector<16x32xf32>
    %99 = arith.mulf %98, %98 : vector<16x32xf32>
    %cst_24 = arith.constant dense<0.000000e+00> : vector<16xf32>
    %100 = vector.multi_reduction <add>, %99, %cst_24 [1] : vector<16x32xf32> to vector<16xf32>
    %101 = vector.shape_cast %100 : vector<16xf32> to vector<16x1xf32>
    %cst_25 = arith.constant 3.200000e+01 : f32
    %102 = vector.broadcast %cst_25 : f32 to vector<16x1xf32>
    %103 = arith.divf %101, %102 : vector<16x1xf32>
    %104 = vector.broadcast %96 : vector<16x1xf32> to vector<16x32xf32>
    %105 = arith.subf %90, %104 : vector<16x32xf32>
    %cst_26 = arith.constant 9.99999974E-6 : f32
    %106 = vector.broadcast %cst_26 : f32 to vector<16x1xf32>
    %107 = arith.addf %103, %106 : vector<16x1xf32>
    %108 = math.rsqrt %107 : vector<16x1xf32>
    %109 = vector.broadcast %108 : vector<16x1xf32> to vector<16x32xf32>
    %110 = arith.mulf %105, %109 : vector<16x32xf32>
    %111 = vector.broadcast %91 : vector<1x32xf32> to vector<16x32xf32>
    %112 = arith.mulf %110, %111 : vector<16x32xf32>
    %113 = vector.broadcast %92 : vector<1x32xf32> to vector<16x32xf32>
    %114 = arith.addf %112, %113 : vector<16x32xf32>
    %115 = arith.truncf %114 : vector<16x32xf32> to vector<16x32xbf16>
    %c0_27 = arith.constant 0 : index
    %c0_28 = arith.constant 0 : index
    %c0_29 = arith.constant 0 : index
    %116 = vector.load %arg6[%c0_27, %c0_28, %c0_29] : memref<1x32x32xbf16, #tpu.memory_space<vmem>>, vector<1x32x32xbf16>
    %117 = vector.shape_cast %116 : vector<1x32x32xbf16> to vector<32x32xbf16>
    %cst_30 = arith.constant dense<0.000000e+00> : vector<16x32xf32>
    %118 = tpu.matmul %115, %117, %cst_30 {dimension_numbers = #tpu.dot_dimension_numbers<[1], [0], [0], [1], [0, 0, 1, 1], [], []>} : vector<16x32xbf16>, vector<32x32xbf16>, vector<16x32xf32> -> vector<16x32xf32>
    %119 = vector.extract_strided_slice %8 {offsets = [4, 0], sizes = [1, 32], strides = [1, 1]} : vector<13x96xf32> to vector<1x32xf32>
    %120 = vector.broadcast %119 : vector<1x32xf32> to vector<16x32xf32>
    %121 = arith.addf %118, %120 : vector<16x32xf32>
    %c0_31 = arith.constant 0 : index
    %c0_32 = arith.constant 0 : index
    %c0_33 = arith.constant 0 : index
    %122 = vector.load %arg7[%c0_31, %c0_32, %c0_33] : memref<1x32x64xbf16, #tpu.memory_space<vmem>>, vector<1x32x64xbf16>
    %123 = vector.shape_cast %122 : vector<1x32x64xbf16> to vector<32x64xbf16>
    %cst_34 = arith.constant dense<0.000000e+00> : vector<16x64xf32>
    %124 = tpu.matmul %6, %123, %cst_34 {dimension_numbers = #tpu.dot_dimension_numbers<[1], [0], [0], [1], [0, 0, 1, 1], [], []>} : vector<16x32xbf16>, vector<32x64xbf16>, vector<16x64xf32> -> vector<16x64xf32>
    %125 = vector.extract_strided_slice %8 {offsets = [5, 0], sizes = [1, 64], strides = [1, 1]} : vector<13x96xf32> to vector<1x64xf32>
    %126 = vector.broadcast %125 : vector<1x64xf32> to vector<16x64xf32>
    %127 = arith.addf %124, %126 : vector<16x64xf32>
    %128 = vector.extract_strided_slice %127 {offsets = [0, 0], sizes = [16, 32], strides = [1, 1]} : vector<16x64xf32> to vector<16x32xf32>
    %129 = vector.extract_strided_slice %127 {offsets = [0, 32], sizes = [16, 32], strides = [1, 1]} : vector<16x64xf32> to vector<16x32xf32>
    %130 = vector.shape_cast %121 : vector<16x32xf32> to vector<2x8x32xf32>
    %131 = vector.extract_strided_slice %130 {offsets = [0, 0, 0], sizes = [2, 8, 8], strides = [1, 1, 1]} : vector<2x8x32xf32> to vector<2x8x8xf32>
    %132 = vector.extract_strided_slice %130 {offsets = [0, 0, 8], sizes = [2, 8, 8], strides = [1, 1, 1]} : vector<2x8x32xf32> to vector<2x8x8xf32>
    %133 = vector.extract_strided_slice %130 {offsets = [0, 0, 16], sizes = [2, 8, 8], strides = [1, 1, 1]} : vector<2x8x32xf32> to vector<2x8x8xf32>
    %134 = vector.extract_strided_slice %130 {offsets = [0, 0, 24], sizes = [2, 8, 8], strides = [1, 1, 1]} : vector<2x8x32xf32> to vector<2x8x8xf32>
    %135 = vector.shape_cast %131 : vector<2x8x8xf32> to vector<2x1x8x8xf32>
    %136 = vector.shape_cast %132 : vector<2x8x8xf32> to vector<2x1x8x8xf32>
    %137 = vector.shape_cast %133 : vector<2x8x8xf32> to vector<2x1x8x8xf32>
    %138 = vector.shape_cast %134 : vector<2x8x8xf32> to vector<2x1x8x8xf32>
    %139 = tpu.concatenate %135, %136, %137, %138 in 1 : vector<2x1x8x8xf32>, vector<2x1x8x8xf32>, vector<2x1x8x8xf32>, vector<2x1x8x8xf32> -> vector<2x4x8x8xf32>
    %140 = vector.shape_cast %139 : vector<2x4x8x8xf32> to vector<8x8x8xf32>
    %141 = arith.truncf %140 : vector<8x8x8xf32> to vector<8x8x8xbf16>
    %142 = vector.shape_cast %128 : vector<16x32xf32> to vector<2x8x32xf32>
    %143 = vector.extract_strided_slice %142 {offsets = [0, 0, 0], sizes = [2, 8, 8], strides = [1, 1, 1]} : vector<2x8x32xf32> to vector<2x8x8xf32>
    %144 = vector.extract_strided_slice %142 {offsets = [0, 0, 8], sizes = [2, 8, 8], strides = [1, 1, 1]} : vector<2x8x32xf32> to vector<2x8x8xf32>
    %145 = vector.extract_strided_slice %142 {offsets = [0, 0, 16], sizes = [2, 8, 8], strides = [1, 1, 1]} : vector<2x8x32xf32> to vector<2x8x8xf32>
    %146 = vector.extract_strided_slice %142 {offsets = [0, 0, 24], sizes = [2, 8, 8], strides = [1, 1, 1]} : vector<2x8x32xf32> to vector<2x8x8xf32>
    %147 = vector.shape_cast %143 : vector<2x8x8xf32> to vector<2x1x8x8xf32>
    %148 = vector.shape_cast %144 : vector<2x8x8xf32> to vector<2x1x8x8xf32>
    %149 = vector.shape_cast %145 : vector<2x8x8xf32> to vector<2x1x8x8xf32>
    %150 = vector.shape_cast %146 : vector<2x8x8xf32> to vector<2x1x8x8xf32>
    %151 = tpu.concatenate %147, %148, %149, %150 in 1 : vector<2x1x8x8xf32>, vector<2x1x8x8xf32>, vector<2x1x8x8xf32>, vector<2x1x8x8xf32> -> vector<2x4x8x8xf32>
    %152 = vector.shape_cast %151 : vector<2x4x8x8xf32> to vector<8x8x8xf32>
    %153 = arith.truncf %152 : vector<8x8x8xf32> to vector<8x8x8xbf16>
    %154 = vector.shape_cast %129 : vector<16x32xf32> to vector<2x8x32xf32>
    %155 = vector.extract_strided_slice %154 {offsets = [0, 0, 0], sizes = [2, 8, 8], strides = [1, 1, 1]} : vector<2x8x32xf32> to vector<2x8x8xf32>
    %156 = vector.extract_strided_slice %154 {offsets = [0, 0, 8], sizes = [2, 8, 8], strides = [1, 1, 1]} : vector<2x8x32xf32> to vector<2x8x8xf32>
    %157 = vector.extract_strided_slice %154 {offsets = [0, 0, 16], sizes = [2, 8, 8], strides = [1, 1, 1]} : vector<2x8x32xf32> to vector<2x8x8xf32>
    %158 = vector.extract_strided_slice %154 {offsets = [0, 0, 24], sizes = [2, 8, 8], strides = [1, 1, 1]} : vector<2x8x32xf32> to vector<2x8x8xf32>
    %159 = vector.shape_cast %155 : vector<2x8x8xf32> to vector<2x1x8x8xf32>
    %160 = vector.shape_cast %156 : vector<2x8x8xf32> to vector<2x1x8x8xf32>
    %161 = vector.shape_cast %157 : vector<2x8x8xf32> to vector<2x1x8x8xf32>
    %162 = vector.shape_cast %158 : vector<2x8x8xf32> to vector<2x1x8x8xf32>
    %163 = tpu.concatenate %159, %160, %161, %162 in 1 : vector<2x1x8x8xf32>, vector<2x1x8x8xf32>, vector<2x1x8x8xf32>, vector<2x1x8x8xf32> -> vector<2x4x8x8xf32>
    %164 = vector.shape_cast %163 : vector<2x4x8x8xf32> to vector<8x8x8xf32>
    %165 = arith.truncf %164 : vector<8x8x8xf32> to vector<8x8x8xbf16>
    "tpu.trace_start"() <{level = 10 : i32, message = "bqd,bkd->bqk"}> : () -> ()
    %cst_35 = arith.constant dense<0.000000e+00> : vector<8x8x8xf32>
    %166 = tpu.matmul %141, %153, %cst_35 {dimension_numbers = #tpu.dot_dimension_numbers<[2], [2], [1], [1], [0, 0, 0, 1, 1, 1], [0], [0]>} : vector<8x8x8xbf16>, vector<8x8x8xbf16>, vector<8x8x8xf32> -> vector<8x8x8xf32>
    "tpu.trace_stop"() : () -> ()
    %cst_36 = arith.constant dense<0xFF800000> : vector<8x8xf32>
    %167 = vector.multi_reduction <maximumf>, %166, %cst_36 [2] : vector<8x8x8xf32> to vector<8x8xf32>
    %168 = vector.shape_cast %167 : vector<8x8xf32> to vector<8x8x1xf32>
    %169 = vector.broadcast %168 : vector<8x8x1xf32> to vector<8x8x8xf32>
    %170 = arith.subf %166, %169 : vector<8x8x8xf32>
    %171 = math.exp %170 : vector<8x8x8xf32>
    %cst_37 = arith.constant dense<0.000000e+00> : vector<8x8xf32>
    %172 = vector.multi_reduction <add>, %171, %cst_37 [2] : vector<8x8x8xf32> to vector<8x8xf32>
    %173 = vector.shape_cast %172 : vector<8x8xf32> to vector<8x8x1xf32>
    %174 = tpu.reciprocal %173 {approx = true} : vector<8x8x1xf32> -> vector<8x8x1xf32>
    %175 = vector.broadcast %174 : vector<8x8x1xf32> to vector<8x8x8xf32>
    %176 = arith.mulf %171, %175 : vector<8x8x8xf32>
    %177 = arith.truncf %176 : vector<8x8x8xf32> to vector<8x8x8xbf16>
    "tpu.trace_start"() <{level = 10 : i32, message = "bqk,bkd->bqd"}> : () -> ()
    %cst_38 = arith.constant dense<0.000000e+00> : vector<8x8x8xf32>
    %178 = tpu.matmul %177, %165, %cst_38 {dimension_numbers = #tpu.dot_dimension_numbers<[2], [1], [1], [2], [0, 0, 0, 1, 1, 2], [0], [0]>} : vector<8x8x8xbf16>, vector<8x8x8xbf16>, vector<8x8x8xf32> -> vector<8x8x8xf32>
    "tpu.trace_stop"() : () -> ()
    %179 = vector.shape_cast %178 : vector<8x8x8xf32> to vector<2x4x8x8xf32>
    %180 = vector.extract_strided_slice %179 {offsets = [0, 0, 0, 0], sizes = [2, 1, 8, 8], strides = [1, 1, 1, 1]} : vector<2x4x8x8xf32> to vector<2x1x8x8xf32>
    %181 = vector.shape_cast %180 : vector<2x1x8x8xf32> to vector<2x8x8xf32>
    %182 = vector.extract_strided_slice %179 {offsets = [0, 1, 0, 0], sizes = [2, 1, 8, 8], strides = [1, 1, 1, 1]} : vector<2x4x8x8xf32> to vector<2x1x8x8xf32>
    %183 = vector.shape_cast %182 : vector<2x1x8x8xf32> to vector<2x8x8xf32>
    %184 = vector.extract_strided_slice %179 {offsets = [0, 2, 0, 0], sizes = [2, 1, 8, 8], strides = [1, 1, 1, 1]} : vector<2x4x8x8xf32> to vector<2x1x8x8xf32>
    %185 = vector.shape_cast %184 : vector<2x1x8x8xf32> to vector<2x8x8xf32>
    %186 = vector.extract_strided_slice %179 {offsets = [0, 3, 0, 0], sizes = [2, 1, 8, 8], strides = [1, 1, 1, 1]} : vector<2x4x8x8xf32> to vector<2x1x8x8xf32>
    %187 = vector.shape_cast %186 : vector<2x1x8x8xf32> to vector<2x8x8xf32>
    %188 = tpu.concatenate %181, %183, %185, %187 in 2 : vector<2x8x8xf32>, vector<2x8x8xf32>, vector<2x8x8xf32>, vector<2x8x8xf32> -> vector<2x8x32xf32>
    %189 = vector.shape_cast %188 : vector<2x8x32xf32> to vector<16x32xf32>
    %190 = arith.truncf %189 : vector<16x32xf32> to vector<16x32xbf16>
    %c0_39 = arith.constant 0 : index
    %c0_40 = arith.constant 0 : index
    %c0_41 = arith.constant 0 : index
    %191 = vector.load %arg8[%c0_39, %c0_40, %c0_41] : memref<1x32x32xbf16, #tpu.memory_space<vmem>>, vector<1x32x32xbf16>
    %192 = vector.shape_cast %191 : vector<1x32x32xbf16> to vector<32x32xbf16>
    %cst_42 = arith.constant dense<0.000000e+00> : vector<16x32xf32>
    %193 = tpu.matmul %190, %192, %cst_42 {dimension_numbers = #tpu.dot_dimension_numbers<[1], [0], [0], [1], [0, 0, 1, 1], [], []>} : vector<16x32xbf16>, vector<32x32xbf16>, vector<16x32xf32> -> vector<16x32xf32>
    %194 = vector.extract_strided_slice %8 {offsets = [6, 0], sizes = [1, 32], strides = [1, 1]} : vector<13x96xf32> to vector<1x32xf32>
    %195 = vector.broadcast %194 : vector<1x32xf32> to vector<16x32xf32>
    %196 = arith.addf %193, %195 : vector<16x32xf32>
    %197 = arith.addf %114, %196 : vector<16x32xf32>
    %198 = vector.extract_strided_slice %8 {offsets = [7, 0], sizes = [1, 32], strides = [1, 1]} : vector<13x96xf32> to vector<1x32xf32>
    %199 = vector.extract_strided_slice %8 {offsets = [8, 0], sizes = [1, 32], strides = [1, 1]} : vector<13x96xf32> to vector<1x32xf32>
    %cst_43 = arith.constant dense<0.000000e+00> : vector<16xf32>
    %200 = vector.multi_reduction <add>, %197, %cst_43 [1] : vector<16x32xf32> to vector<16xf32>
    %201 = vector.shape_cast %200 : vector<16xf32> to vector<16x1xf32>
    %cst_44 = arith.constant 3.200000e+01 : f32
    %202 = vector.broadcast %cst_44 : f32 to vector<16x1xf32>
    %203 = arith.divf %201, %202 : vector<16x1xf32>
    %204 = vector.broadcast %203 : vector<16x1xf32> to vector<16x32xf32>
    %205 = arith.subf %197, %204 : vector<16x32xf32>
    %206 = arith.mulf %205, %205 : vector<16x32xf32>
    %cst_45 = arith.constant dense<0.000000e+00> : vector<16xf32>
    %207 = vector.multi_reduction <add>, %206, %cst_45 [1] : vector<16x32xf32> to vector<16xf32>
    %208 = vector.shape_cast %207 : vector<16xf32> to vector<16x1xf32>
    %cst_46 = arith.constant 3.200000e+01 : f32
    %209 = vector.broadcast %cst_46 : f32 to vector<16x1xf32>
    %210 = arith.divf %208, %209 : vector<16x1xf32>
    %211 = vector.broadcast %203 : vector<16x1xf32> to vector<16x32xf32>
    %212 = arith.subf %197, %211 : vector<16x32xf32>
    %cst_47 = arith.constant 9.99999974E-6 : f32
    %213 = vector.broadcast %cst_47 : f32 to vector<16x1xf32>
    %214 = arith.addf %210, %213 : vector<16x1xf32>
    %215 = math.rsqrt %214 : vector<16x1xf32>
    %216 = vector.broadcast %215 : vector<16x1xf32> to vector<16x32xf32>
    %217 = arith.mulf %212, %216 : vector<16x32xf32>
    %218 = vector.broadcast %198 : vector<1x32xf32> to vector<16x32xf32>
    %219 = arith.mulf %217, %218 : vector<16x32xf32>
    %220 = vector.broadcast %199 : vector<1x32xf32> to vector<16x32xf32>
    %221 = arith.addf %219, %220 : vector<16x32xf32>
    %222 = arith.truncf %221 : vector<16x32xf32> to vector<16x32xbf16>
    %c0_48 = arith.constant 0 : index
    %c0_49 = arith.constant 0 : index
    %c0_50 = arith.constant 0 : index
    %223 = vector.load %arg9[%c0_48, %c0_49, %c0_50] : memref<1x32x64xbf16, #tpu.memory_space<vmem>>, vector<1x32x64xbf16>
    %224 = vector.shape_cast %223 : vector<1x32x64xbf16> to vector<32x64xbf16>
    %cst_51 = arith.constant dense<0.000000e+00> : vector<16x64xf32>
    %225 = tpu.matmul %222, %224, %cst_51 {dimension_numbers = #tpu.dot_dimension_numbers<[1], [0], [0], [1], [0, 0, 1, 1], [], []>} : vector<16x32xbf16>, vector<32x64xbf16>, vector<16x64xf32> -> vector<16x64xf32>
    %226 = vector.extract_strided_slice %8 {offsets = [9, 0], sizes = [1, 64], strides = [1, 1]} : vector<13x96xf32> to vector<1x64xf32>
    %227 = vector.broadcast %226 : vector<1x64xf32> to vector<16x64xf32>
    %228 = arith.addf %225, %227 : vector<16x64xf32>
    %cst_52 = arith.constant 0.000000e+00 : f32
    %229 = vector.broadcast %cst_52 : f32 to vector<16x64xf32>
    %230 = arith.maximumf %228, %229 : vector<16x64xf32>
    %231 = arith.truncf %230 : vector<16x64xf32> to vector<16x64xbf16>
    %c0_53 = arith.constant 0 : index
    %c0_54 = arith.constant 0 : index
    %c0_55 = arith.constant 0 : index
    %232 = vector.load %arg10[%c0_53, %c0_54, %c0_55] : memref<1x64x32xbf16, #tpu.memory_space<vmem>>, vector<1x64x32xbf16>
    %233 = vector.shape_cast %232 : vector<1x64x32xbf16> to vector<64x32xbf16>
    %cst_56 = arith.constant dense<0.000000e+00> : vector<16x32xf32>
    %234 = tpu.matmul %231, %233, %cst_56 {dimension_numbers = #tpu.dot_dimension_numbers<[1], [0], [0], [1], [0, 0, 1, 1], [], []>} : vector<16x64xbf16>, vector<64x32xbf16>, vector<16x32xf32> -> vector<16x32xf32>
    %235 = vector.extract_strided_slice %8 {offsets = [10, 0], sizes = [1, 32], strides = [1, 1]} : vector<13x96xf32> to vector<1x32xf32>
    %236 = vector.broadcast %235 : vector<1x32xf32> to vector<16x32xf32>
    %237 = arith.addf %234, %236 : vector<16x32xf32>
    %238 = arith.addf %221, %237 : vector<16x32xf32>
    %239 = vector.extract_strided_slice %8 {offsets = [11, 0], sizes = [1, 32], strides = [1, 1]} : vector<13x96xf32> to vector<1x32xf32>
    %240 = vector.extract_strided_slice %8 {offsets = [12, 0], sizes = [1, 32], strides = [1, 1]} : vector<13x96xf32> to vector<1x32xf32>
    %cst_57 = arith.constant dense<0.000000e+00> : vector<16xf32>
    %241 = vector.multi_reduction <add>, %238, %cst_57 [1] : vector<16x32xf32> to vector<16xf32>
    %242 = vector.shape_cast %241 : vector<16xf32> to vector<16x1xf32>
    %cst_58 = arith.constant 3.200000e+01 : f32
    %243 = vector.broadcast %cst_58 : f32 to vector<16x1xf32>
    %244 = arith.divf %242, %243 : vector<16x1xf32>
    %245 = vector.broadcast %244 : vector<16x1xf32> to vector<16x32xf32>
    %246 = arith.subf %238, %245 : vector<16x32xf32>
    %247 = arith.mulf %246, %246 : vector<16x32xf32>
    %cst_59 = arith.constant dense<0.000000e+00> : vector<16xf32>
    %248 = vector.multi_reduction <add>, %247, %cst_59 [1] : vector<16x32xf32> to vector<16xf32>
    %249 = vector.shape_cast %248 : vector<16xf32> to vector<16x1xf32>
    %cst_60 = arith.constant 3.200000e+01 : f32
    %250 = vector.broadcast %cst_60 : f32 to vector<16x1xf32>
    %251 = arith.divf %249, %250 : vector<16x1xf32>
    %252 = vector.broadcast %244 : vector<16x1xf32> to vector<16x32xf32>
    %253 = arith.subf %238, %252 : vector<16x32xf32>
    %cst_61 = arith.constant 9.99999974E-6 : f32
    %254 = vector.broadcast %cst_61 : f32 to vector<16x1xf32>
    %255 = arith.addf %251, %254 : vector<16x1xf32>
    %256 = math.rsqrt %255 : vector<16x1xf32>
    %257 = vector.broadcast %256 : vector<16x1xf32> to vector<16x32xf32>
    %258 = arith.mulf %253, %257 : vector<16x32xf32>
    %259 = vector.broadcast %239 : vector<1x32xf32> to vector<16x32xf32>
    %260 = arith.mulf %258, %259 : vector<16x32xf32>
    %261 = vector.broadcast %240 : vector<1x32xf32> to vector<16x32xf32>
    %262 = arith.addf %260, %261 : vector<16x32xf32>
    %263 = vector.shape_cast %262 : vector<16x32xf32> to vector<2x8x32xf32>
    %c0_62 = arith.constant 0 : index
    %c0_63 = arith.constant 0 : index
    %c0_64 = arith.constant 0 : index
    %264 = vector.load %arg12[%c0_62, %c0_63, %c0_64] : memref<2x8x32xf32, #tpu.memory_space<vmem>>, vector<2x8x32xf32>
    tpu.vector_store %arg12[%c0_62, %c0_63, %c0_64], %263 {strides = array<i32>} : memref<2x8x32xf32, #tpu.memory_space<vmem>>, vector<2x8x32xf32>,
    return
  }
  func.func @transform_0(%arg0: i32, %arg1: i32) -> (i32, i32, i32) {
    %c0_i32 = arith.constant 0 : i32
    %c0_i32_0 = arith.constant 0 : i32
    %c0_i32_1 = arith.constant 0 : i32
    return %arg0, %c0_i32, %c0_i32_0 : i32, i32, i32
  }
  func.func @transform_1(%arg0: i32, %arg1: i32) -> (i32, i32, i32) {
    %c0_i32 = arith.constant 0 : i32
    %c0_i32_0 = arith.constant 0 : i32
    %c0_i32_1 = arith.constant 0 : i32
    return %arg0, %c0_i32, %c0_i32_0 : i32, i32, i32
  }
  func.func @transform_2(%arg0: i32, %arg1: i32) -> (i32, i32, i32) {
    %c0_i32 = arith.constant 0 : i32
    %c0_i32_0 = arith.constant 0 : i32
    %c0_i32_1 = arith.constant 0 : i32
    return %arg1, %c0_i32, %c0_i32_0 : i32, i32, i32
  }
  func.func @transform_3(%arg0: i32, %arg1: i32) -> (i32, i32, i32) {
    %c0_i32 = arith.constant 0 : i32
    %c0_i32_0 = arith.constant 0 : i32
    %c0_i32_1 = arith.constant 0 : i32
    return %arg1, %c0_i32, %c0_i32_0 : i32, i32, i32
  }
  func.func @transform_4(%arg0: i32, %arg1: i32) -> (i32, i32, i32) {
    %c0_i32 = arith.constant 0 : i32
    %c0_i32_0 = arith.constant 0 : i32
    %c0_i32_1 = arith.constant 0 : i32
    return %arg1, %c0_i32, %c0_i32_0 : i32, i32, i32
  }
  func.func @transform_5(%arg0: i32, %arg1: i32) -> (i32, i32, i32) {
    %c0_i32 = arith.constant 0 : i32
    %c0_i32_0 = arith.constant 0 : i32
    %c0_i32_1 = arith.constant 0 : i32
    return %arg1, %c0_i32, %c0_i32_0 : i32, i32, i32
  }
  func.func @transform_6(%arg0: i32, %arg1: i32) -> (i32, i32, i32) {
    %c0_i32 = arith.constant 0 : i32
    %c0_i32_0 = arith.constant 0 : i32
    %c0_i32_1 = arith.constant 0 : i32
    return %arg1, %c0_i32, %c0_i32_0 : i32, i32, i32
  }
  func.func @transform_7(%arg0: i32, %arg1: i32) -> (i32, i32, i32) {
    %c0_i32 = arith.constant 0 : i32
    %c0_i32_0 = arith.constant 0 : i32
    %c0_i32_1 = arith.constant 0 : i32
    return %arg1, %c0_i32, %c0_i32_0 : i32, i32, i32
  }
  func.func @transform_8(%arg0: i32, %arg1: i32) -> (i32, i32, i32) {
    %c0_i32 = arith.constant 0 : i32
    %c0_i32_0 = arith.constant 0 : i32
    %c0_i32_1 = arith.constant 0 : i32
    return %arg1, %c0_i32, %c0_i32_0 : i32, i32, i32
  }
  func.func @transform_9(%arg0: i32, %arg1: i32) -> (i32, i32, i32) {
    %c0_i32 = arith.constant 0 : i32
    %c0_i32_0 = arith.constant 0 : i32
    %c0_i32_1 = arith.constant 0 : i32
    return %arg1, %c0_i32, %c0_i32_0 : i32, i32, i32
  }
  func.func @transform_10(%arg0: i32, %arg1: i32) -> (i32, i32, i32) {
    %c0_i32 = arith.constant 0 : i32
    %c0_i32_0 = arith.constant 0 : i32
    %c0_i32_1 = arith.constant 0 : i32
    return %arg0, %c0_i32, %c0_i32_0 : i32, i32, i32
  }
}

</mosaic_0001>

<bundles_post_ra>
// kernel: tpu_custom_call.1
= control target key start
LH: loop header
LB: loop body
LE: loop exit
PB: predicated region body
PF: predicated region fallthrough
CT: control target
= control target key end

     0   :  { %s4930_s0 = inlined_call_operand.hbm [shape: bf16[2,8,32], index: 0, kind: input, shape index: {}]   ;;  %s4931_s1 = inlined_call_operand.hbm [shape: f32[2,8,32], index: 1, kind: input, shape index: {}]   ;;  %s4932_s2 = inlined_call_operand.vmem [shape: bf16[2,32,96], index: 2, kind: input, shape index: {}]   ;;  %s4933_s3 = inlined_call_operand.vmem [shape: bf16[2,32,32], index: 3, kind: input, shape index: {}]   ;;  %s4934_s4 = inlined_call_operand.vmem [shape: bf16[2,32,32], index: 4, kind: input, shape index: {}]   ;;  %s4935_s5 = inlined_call_operand.vmem [shape: bf16[2,32,64], index: 5, kind: input, shape index: {}]   ;;  %s4936_s6 = inlined_call_operand.hbm [shape: bf16[2,32,32], index: 6, kind: input, shape index: {}]   ;;  %s4937_s7 = inlined_call_operand.hbm [shape: bf16[2,32,64], index: 7, kind: input, shape index: {}]   ;;  %s4938_s8 = inlined_call_operand.vmem [shape: bf16[2,64,32], index: 8, kind: input, shape index: {}]   ;;  %s4939_s9 = inlined_call_operand.vmem [shape: f32[2,13,96], index: 9, kind: input, shape index: {}]   ;;  %s4940_s10 = inlined_call_operand.hbm [shape: f32[2,8,32], index: 10, kind: output, shape index: {}]  }
   0x1   :  { %4950 = sst [smem:[#allocation19_spill]] %s4930_s0 }
   0x2   :  { %4951 = sst [smem:[#allocation20_spill]] %s4935_s5 }
   0x3   :  { %4952 = sst [smem:[#allocation21_spill]] %s4936_s6 }
   0x4   :  { %4953 = sst [smem:[#allocation22_spill]] %s4938_s8 }
   0x5   :  { %4954 = sst [smem:[#allocation23_spill]] %s4939_s9 }
   0x6   :  { %4955 = sst [smem:[#allocation24_spill]] %s4940_s10 }
   0x7   :  { %15 = vsyncpa [#allocation4], 0 }
   0x8   :  { %16 = vsyncpa [#allocation7], 0 }
   0x9   :  { %17 = vsyncpa [#allocation5], 0  ;;  %s4213_s13 = smov 0   ;;  %s4215_s14 = smov 0  }
   0xa   :  { %s4217_s15 = smov 0   ;;  %s4219_s16 = smov 0  }
   0xb   :  { %s4221_s17 = smov 0   ;;  %s4223_s18 = smov 0  }
   0xc LB: > { %4956 = sst [smem:[#allocation15_spill]] %s4123_s15  ;;  %s4242_s19 = sadd.s32 4294967295, %s4135_s18   ;;  %s4135_s18 = sphi %s4223_s18, %s23_s18   ;;  %s4131_s17 = sphi %s4221_s17, %s4985_s17   ;;  %s4127_s16 = sphi %s4219_s16, %s4984_s16   ;;  %s4123_s15 = sphi %s4217_s15, %s4980_s15   ;;  %s4119_s14 = sphi %s4215_s14, %s4983_s14   ;;  %s4115_s13 = sphi %s4213_s13, %s4982_s13  }
   0xd   : > { %4957 = sst [smem:[#allocation16_spill]] %s4135_s18  ;;  %p205_p0 = scmp.ne.s32.totalorder %s4123_s15, %s4119_s14 }
   0xe   : > { %p206_p1 = scmp.eq.s32.totalorder %s4135_s18, 0  ;;  %p211_p2 = scmp.ne.s32.totalorder %s4119_s14, %s4115_s13 }
   0xf   : > { %p4941_p3 = scmp.eq.s32.totalorder %s4242_s19, 0  ;;  %p3278_p5 = scmp.ge.s32.totalorder %s4135_s18, 1 }
  0x10   : > { %p207_p4 = por %p206_p1, %p205_p0  ;;  %p326_p7 = scmp.lt.s32.totalorder %s4135_s18, 3 }
  0x11   : > { %p4253_p6 = por %p4941_p3, %p211_p2  ;;  %s4137_s23 = smov [#allocation3]  }
  0x12   : > { %p4258_p8 = pnand %p3278_p5, %p326_p7  ;;  %s341_s24 = sshll.u32 %s4137_s23, 4  ;;  %s342_s24 = int_to_ptr.vmem [resolvable:$true] %s341_s24 }
  0x13   : > { %p3745_p10 = scmp.lt.s32.totalorder %s4135_s18, 2  ;;  %s32_s27 = sadd.s32 1, %s4131_s17 }
  0x14   : > { %p3729_p9 = pneg %p4258_p8  ;;  %s3952_s28 = scalar_lea.vmem %s342_s24, 128 }
  0x15   : > { %p4271_p12 = pnand %p3745_p10, %p207_p4  ;;  %p3953_p0 = scmp.ne.s32.totalorder %s342_s24, %s3952_s28 }
  0x16   : > { %p4267_p11 = pnand %p3729_p9, %p4941_p3  ;;  %p3960_p5 = scmp.lt.s32.totalorder %s342_s24, %s342_s24 }
  0x17   : > { %p3961_p7 = scmp.lt.s32.totalorder %s3952_s28, %s3952_s28 }
  0x18   : > { %p3943_p13 = pneg %p4267_p11 }
  0x19   : > { %p3962_p9 = por %p3961_p7, %p3960_p5 }
  0x1a   : > { %p3955_p1 = pnand %p3953_p0, %p3943_p13 }
  0x1c   : > { %p3956_p2 = pneg %p3955_p1 }
  0x1e   : > { %p3963_p3 = pnand %p3962_p9, %p3956_p2 }
  0x20   : > { %3966 = shalt.err (!%p3963_p3)
}
  0x21   : > { %s4942_s29 = smov 64   ;;  %s4944_s30 = smov 4  }
  0x22   : > { %s4962_s0 = sld [smem:[#allocation19_spill]]  ;;  %p33_p3 = scmp.ge.s32.totalorder %s32_s27, 2 }
  0x23   : > { %s403_s13 = sand.u32 1, %s4135_s18   ;;  %s405_s23 = sand.u32 1, %s4123_s15  }
  0x24   : > { %s4987_s27 = smov (%p33_p3, %s32_s27), 0  ;;  %s4293_s28 = sshll.u32 %s405_s23, 4 }
  0x25   : > { %4963 = sst [smem:[#allocation17_spill]] %s4987_s27  ;;  %s195_s20 = ssub.s32 %s4131_s17, %s4987_s27 }
  0x26   : > { %p196_p4 = scmp.eq.s32.totalorder %s195_s20, 0  ;;  %s4947_s10 = sshll.u32 %s4131_s17, 8 }
  0x27   : > { %s4964_s6 = sld [smem:[#allocation21_spill]]  ;;  %s407_s12 = scalar_lea.vmem [#allocation8], %s4293_s28 }
  0x28   : > { %3732 = dma.hbm_to_vmem [thread:$0]  (!%p4267_p11), %s4962_s0, 128, %s342_s24, [#allocation4], %s4942_s29, %s4942_s29, %s4944_s30  }
  0x29   : > { %s414_s24 = sshll.u32 %s407_s12, 4  ;;  %s4965_s29 = sadd.s32 1, %s4123_s15  ;;  %s415_s24 = int_to_ptr.vmem [resolvable:$true] %s414_s24 }
  0x2a   : > { %s4307_s30 = scalar_select %p196_p4, %s4123_s15, %s4965_s29  }
  0x2b   : > { %s4309_s0 = scalar_lea.sflag [#allocation4], %s403_s13  ;;  %p3969_p10 = pneg %p4271_p12 }
  0x2c   : > { %4966 = sst [smem:[#allocation18_spill]] %s4307_s30  ;;  %s3980_s23 = scalar_lea.vmem %s415_s24, 256 }
  0x2d   : > { %s413_s11 = scalar_lea.hbm %s4964_s6, %s4947_s10  ;;  %p3981_p0 = scmp.ne.s32.totalorder %s415_s24, %s3980_s23 }
  0x2e   : > { %s4140_s20 = smov [#allocation8]  }
  0x2f   : > { %p3983_p1 = pnand %p3981_p0, %p3969_p10  ;;  %s3985_s27 = sshll.u32 %s4140_s20, 4  ;;  %s3986_s27 = int_to_ptr.vmem [resolvable:$false] %s3985_s27 }
  0x30   : > { %s3987_s8 = scalar_lea.vmem %s3986_s27, 512  ;;  %p3988_p5 = scmp.lt.s32.totalorder %s415_s24, %s3986_s27 }
  0x31   : > { %p3984_p2 = pneg %p3983_p1  ;;  %p3989_p7 = scmp.lt.s32.totalorder %s3987_s8, %s3980_s23 }
  0x33   : > { %p3990_p9 = por %p3989_p7, %p3988_p5 }
  0x35   : > { %p3991_p3 = pnand %p3990_p9, %p3984_p2 }
  0x37   : > { %3994 = shalt.err (!%p3991_p3)
}
  0x38   : > { %s4967_s9 = smov 4   ;;  %s4968_s29 = smov 64  }
  0x39   : > { %3739 = dma.hbm_to_vmem [thread:$0]  (!%p4271_p12), %s413_s11, 256, %s415_s24, %s4309_s0, %s4968_s29, %s4968_s29, %s4967_s9  }
  0x3a   : > { %s4141_s13 = smov [#allocation6]  }
  0x3b   : > { %s357_s12 = sshll.u32 %s4141_s13, 4  ;;  %s358_s12 = int_to_ptr.vmem [resolvable:$true] %s357_s12 }
  0x3c   : > { %s4006_s10 = scalar_lea.vmem %s358_s12, 256  ;;  %p4014_p5 = scmp.lt.s32.totalorder %s358_s12, %s358_s12 }
  0x3d   : > { %p4007_p4 = scmp.ne.s32.totalorder %s358_s12, %s4006_s10  ;;  %p4015_p2 = scmp.lt.s32.totalorder %s4006_s10, %s4006_s10 }
  0x3f   : > { %p4009_p0 = pnand %p4007_p4, %p3943_p13  ;;  %p4016_p7 = por %p4015_p2, %p4014_p5 }
  0x41   : > { %p4010_p1 = pneg %p4009_p0 }
  0x43   : > { %p4017_p9 = pnand %p4016_p7, %p4010_p1 }
  0x45   : > { %4020 = shalt.err (!%p4017_p9)
}
  0x46   : > { %s4142_s27 = smov 128   ;;  %s4143_s11 = smov 8  }
  0x47   : > { %3735 = dma.hbm_to_vmem [thread:$0]  (!%p4267_p11), %s4931_s1, 256, %s358_s12, [#allocation7], %s4142_s27, %s4142_s27, %s4143_s11  }
  0x48   : > { %s4969_s20 = sshll.u32 %s4131_s17, 8  ;;  %s428_s10 = scalar_lea.vmem [#allocation9], %s4293_s28 }
  0x49   : > { %s434_s6 = scalar_lea.hbm %s4937_s7, %s4969_s20  ;;  %s435_s30 = sshll.u32 %s428_s10, 4  ;;  %s436_s30 = int_to_ptr.vmem [resolvable:$true] %s435_s30 }
  0x4a   : > { %s4034_s15 = scalar_lea.vmem %s436_s30, 256  ;;  %s4144_s18 = smov [#allocation9]  }
  0x4b   : > { %p4035_p13 = scmp.ne.s32.totalorder %s436_s30, %s4034_s15  ;;  %s4039_s25 = sshll.u32 %s4144_s18, 4  ;;  %s4040_s25 = int_to_ptr.vmem [resolvable:$false] %s4039_s25 }
  0x4c   : > { %s4041_s5 = scalar_lea.vmem %s4040_s25, 512  ;;  %p4042_p0 = scmp.lt.s32.totalorder %s436_s30, %s4040_s25 }
  0x4d   : > { %p4037_p3 = pnand %p4035_p13, %p3969_p10  ;;  %p4043_p11 = scmp.lt.s32.totalorder %s4041_s5, %s4034_s15 }
  0x4f   : > { %p4038_p4 = pneg %p4037_p3  ;;  %p4044_p1 = por %p4043_p11, %p4042_p0 }
  0x51   : > { %p4045_p5 = pnand %p4044_p1, %p4038_p4 }
  0x53   : > { %4048 = shalt.err (!%p4045_p5)
}
  0x54   : > { %3742 = dma.hbm_to_vmem [thread:$0]  (!%p4271_p12), %s434_s6, 256, %s436_s30, %s4309_s0, %s4968_s29, %s4968_s29, %s4967_s9  }
  0x55   : > { %463 = sbr.rel (%p4258_p8) target bundleno = 4403 (0x1133), region = 60  ;;  %p4970_p10 = scmp.eq.s32.totalorder (!%p4258_p8), %s4242_s19, 0 }
  0x5a   : > { %4098 = dma.done.wait (%p4970_p10), [#allocation4], 128   ;;  %p4971_p2 = pmov %p4970_p10 }
  0x5c   : > { %4100 = vsyncadd (%p4971_p2), [#allocation4], 4294967168  ;;  %p4972_p7 = pmov %p4971_p2 }
  0x5d   : > { %p4973_p9 = pmov %p4971_p2 }
  0x5e   : > { %4102 = dma.done.wait (%p4972_p7), [#allocation7], 256  }
  0x5f   : > { %4104 = vsyncadd (%p4973_p9), [#allocation7], 4294967040  ;;  %s473_s5 = sand.u32 1, %s4242_s19   ;;  %s475_s0 = sand.u32 1, %s4119_s14  }
  0x60   : > { %s4357_s6 = sshll.u32 %s475_s0, 4  ;;  %s474_s15 = scalar_lea.sflag [#allocation4], %s473_s5 }
  0x61   : > { %s477_s18 = scalar_lea.vmem [#allocation8], %s4357_s6 }
  0x62   : > { %4106 = dma.done.wait (%p4253_p6), %s474_s15, 512  }
  0x63   : > { %4108 = vsyncadd (%p4253_p6), %s474_s15, 4294966784  ;;  %p555_p8 = scmp.lt.s32.totalorder %s4127_s16, 1  ;;  %s4974_s13 = sld [smem:[#allocation20_spill]] }
  0x64   : > { %s4975_s0 = sld [smem:[#allocation22_spill]]  ;;  %s486_s27 = scalar_lea.vmem [#allocation9], %s4357_s6 }
  0x65   : > { %s556_s22 = scalar_select %p555_p8, %s4127_s16, 1 }
  0x66   : > { %s4976_s9 = sld [smem:[#allocation23_spill]]  ;;  %p3305_p6 = scmp.ne.s32.totalorder %s4127_s16, 0 }
  0x67   : > { %s3368_s26 = sshll.u32 %s556_s22, 4  ;;  %s3372_s30 = sshll.u32 %s556_s22, 5 }
  0x68   : > { %s559_s29 = scalar_lea.vmem %s4932_s2, %s3368_s26  ;;  %s4372_s11 = scalar_lea.vmem %s4933_s3, %s3368_s26 }
  0x69   : > { %s4377_s21 = scalar_lea.vmem %s4934_s4, %s3368_s26  ;;  %s4382_s10 = scalar_lea.vmem %s4974_s13, %s3368_s26 }
  0x6a   : > { %s4387_s15 = scalar_lea.vmem %s4975_s0, %s3372_s30  ;;  %590 = sbr.rel (%p3305_p6) target bundleno = 118 (0x76), region = 80 }
  0x6c   : > { %s4392_s12 = scalar_lea.vmem %s4976_s9, %s3368_s26 }
  0x6f   : > { %v591_v0 = vld [vmem:[#allocation6] sm:$0xff]  ;;  %vm593_vm0 = vcmask 261120   ;;  %v592_v1 = vld [vmem:[#allocation6 + $0x8] sm:$0xff]  ;;  %v596_v2 = vlaneseq  ;;  %vm602_vm1 = vcmask 64512   ;;  %v4145_v5 = vmov 0.0  }
  0x70   : > { %594 = vst.msk [vmem:[#allocation10] sm:$0xff] %vm593_vm0, %v591_v0  ;;  %595 = vst.msk [vmem:[#allocation10 + $0x8] sm:$0xff] %vm593_vm0, %v592_v1 }
  0x71   : > { %v597_v3 = vshrl.u32 %v596_v2, 7  ;;  %v599_v4 = vand.u32 127, %v596_v2 }
  0x73   : > { %vm600_vm2 = vcmp.gt.s32.totalorder %v599_v4, %v597_v3 }
  0x74   : > { %v601_v6 = vsel %vm600_vm2, -1e+09, %v4145_v5 }
  0x75   : > { %603 = vst.msk [vmem:[#allocation2] sm:$0xff] %vm602_vm1, %v601_v6 }
  0x76 PF: > { %v3847_v7 = vld [vmem:[%s559_s29 + $0x8] sm:$0xff]   ;;  %v4146_v8 = vmov 0.0   ;;  %v3848_v9 = vld [vmem:[%s559_s29] sm:$0xff]   ;;  %vm4147_vm3 = vmmov 0   ;;  %vm631_vm4 = vcmask 261120   ;;  %v615_v13 = vlaneseq  ;;  %s4148_s16 = smov 104  }
  0x77   : > { %3461 = vmatprep.subr.bf16.mxu1 %v4146_v8  ;;  %3475 = vmatprep.subr.bf16.mxu0 %v4146_v8  ;;  %v4400_v10 = vld [vmem:[#allocation10] sm:$0xff]  ;;  %v4402_v11 = vld [vmem:[#allocation10 + $0x8] sm:$0xff]  ;;  %s4149_s26 = smov 120   ;;  %s4150_s30 = smov 112   ;;  %vm708_vm5 = vcmask 64512   ;;  %vm1199_vm6 = vcmask 1043456  }
  0x78   : > { %3462 = vmatpush3.bf16.msra.mxu1 %v3847_v7  ;;  %3465 = vmatprep.mubr.msk.bf16.mxu1 %vm4147_vm3, %v4146_v8  ;;  %v610_v12 = vpack.c.bf16 %v4402_v11, %v4400_v10  ;;  %v4413_v14 = vshrl.u32 %v615_v13, 7  ;;  %v4417_v16 = vld [vmem:[%s4392_s12] sm:$0xff]  ;;  %s4151_s29 = smov 96   ;;  %s4152_s24 = smov 64   ;;  %vm1605_vm7 = vcmask 130048   ;;  %vm1608_vm8 = vcmask 195584  }
  0x79   : > { %3463 = vmatprep.subr.bf16.mxu1 %v4146_v8  ;;  %3477 = vmatprep.mubr.msk.bf16.mxu0 %vm4147_vm3, %v4146_v8  ;;  %s4153_s23 = smov 8   ;;  %s4154_s20 = smov 16   ;;  %vm3002_vm9 = vcmask 523264  }
  0x7a   : > { %v617_v15 = vsub.s32 0, %v4413_v14  ;;  %s4156_s6 = smov [#allocation10]   ;;  %p3748_p12 = scmp.eq.s32.totalorder %s4242_s19, 1 }
  0x7c   : > { %3464 = vmatpush3.bf16.msra.mxu1 %v3848_v9  ;;  %v618_v17 = vrot.slane %v4417_v16, %v617_v15  ;;  %v676_v56 = vld [vmem:[#allocation2] sm:$0xff] }
  0x7d   : > { %3469 = vmatprep.subr.bf16.mxu1 %v4146_v8 }
  0x7f   : > { %3466 = vmatmul.mubr.msk.bf16.vlgmr.msra.gmra.mxu1 %vm631_vm4, %v610_v12 }
  0x80   : > { %3471 = vmatprep.mubr.msk.bf16.mxu1 %vm4147_vm3, %v4146_v8 }
 0x13f   : > { %v669_v18 = vpop.f32.mrf.mxu1 }
 0x140   : > { %v670_v19 = vadd.f32 %v669_v18, %v618_v17 }
 0x141   : > { %v3467_v20 = vpop.f32.mrf.mxu1 }
 0x142   : > { %691 = vrot.lane.b32.xlu1 %v670_v19, %s4148_s16  ;;  %679 = vrot.lane.b32.xlu0 %v670_v19, %s4149_s26  ;;  %v697_v24 = vpack.c.bf16 %v670_v19, %v670_v19 }
 0x143   : > { %v672_v21 = vpop.f32.mrf.mxu1 }
 0x144   : > { %v673_v22 = vadd.f32 %v672_v21, %v618_v17 }
 0x145   : > { %v3468_v23 = vpop.f32.mrf.mxu1 }
 0x146   : > { %685 = vrot.lane.b32.xlu0 %v670_v19, %s4150_s30  ;;  %681 = vrot.lane.b32.xlu1 %v673_v22, %s4149_s26  ;;  %v4443_v34 = vpack.c.bf16 %v673_v22, %v673_v22 }
 0x14a   : > { %687 = vrot.lane.b32.xlu0 %v673_v22, %s4150_s30  ;;  %693 = vrot.lane.b32.xlu1 %v673_v22, %s4148_s16 }
 0x14e   : > { %706 = vrot.lane.b32.xlu0 %v697_v24, %s4151_s29 }
 0x1b4   : > { %v692_v25 = vpop.permute.xlu1 %691  ;;  %v680_v26 = vpop.permute.xlu0 %679 }
 0x1b5   : > { %v4429_v27 = vpack.c.bf16 %v680_v26, %v680_v26  ;;  %v4433_v30 = vpack.c.bf16 %v692_v25, %v692_v25 }
 0x1b7   : > { %756 = vrot.lane.b32.xlu1 %v4429_v27, %s4151_s29 }
 0x1b8   : > { %v686_v28 = vpop.permute.xlu0 %685  ;;  %v682_v29 = vpop.permute.xlu1 %681 }
 0x1b9   : > { %v4435_v31 = vpack.c.bf16 %v686_v28, %v686_v28  ;;  %v4441_v33 = vpack.c.bf16 %v682_v29, %v682_v29 }
 0x1bb   : > { %805 = vrot.lane.b32.xlu0 %v4435_v31, %s4151_s29  ;;  %854 = vrot.lane.b32.xlu1 %v4433_v30, %s4151_s29 }
 0x1bc   : > { %v688_v32 = vpop.permute.xlu0 %687  ;;  %v694_v35 = vpop.permute.xlu1 %693 }
 0x1bd   : > { %v4449_v37 = vpack.c.bf16 %v688_v32, %v688_v32  ;;  %v4451_v38 = vpack.c.bf16 %v694_v35, %v694_v35 }
 0x1bf   : > { %952 = vrot.lane.b32.xlu1 %v4441_v33, %s4151_s29  ;;  %903 = vrot.lane.b32.xlu0 %v4443_v34, %s4151_s29 }
 0x1c0   : > { %v707_v36 = vpop.permute.xlu0 %706 }
 0x1c1   : > { %v713_v39 = vsel %vm708_vm5, %v707_v36, 0 }
 0x1c2   : > { %3470 = vmatpush3.bf16.xpose.msra.mxu1 %v713_v39 }
 0x1c3   : > { %1050 = vrot.lane.b32.xlu1 %v4451_v38, %s4151_s29  ;;  %1001 = vrot.lane.b32.xlu0 %v4449_v37, %s4151_s29 }
 0x1c4   : > { %3481 = vmatprep.subr.bf16.mxu1 %v4146_v8 }
 0x1c7   : > { %1194 = vrot.lane.b32.xlu1 %v697_v24, %s4152_s24 }
 0x1c9   : > { %3472 = vmatmul.mubr.msk.bf16.vlgmr.msra.gmra.mxu1 %vm708_vm5, %v697_v24 }
 0x1ca   : > { %3483 = vmatprep.mubr.msk.bf16.mxu1 %vm4147_vm3, %v4146_v8 }
 0x229   : > { %v757_v40 = vpop.permute.xlu1 %756 }
 0x22a   : > { %v762_v41 = vsel %vm708_vm5, %v757_v40, 0 }
 0x22b   : > { %3476 = vmatpush3.bf16.xpose.msra.mxu0 %v762_v41 }
 0x22c   : > { %3487 = vmatprep.subr.bf16.mxu0 %v4146_v8 }
 0x22d   : > { %v806_v42 = vpop.permute.xlu0 %805  ;;  %v855_v44 = vpop.permute.xlu1 %854 }
 0x22e   : > { %v811_v43 = vsel %vm708_vm5, %v806_v42, 0  ;;  %v860_v45 = vsel %vm708_vm5, %v855_v44, 0 }
 0x22f   : > { %3482 = vmatpush3.bf16.xpose.msra.mxu1 %v811_v43 }
 0x230   : > { %3493 = vmatprep.subr.bf16.mxu1 %v4146_v8 }
 0x231   : > { %v904_v46 = vpop.permute.xlu0 %903  ;;  %v953_v48 = vpop.permute.xlu1 %952 }
 0x232   : > { %3478 = vmatmul.mubr.msk.bf16.vlgmr.msra.gmra.mxu0 %vm708_vm5, %v4429_v27  ;;  %v909_v47 = vsel %vm708_vm5, %v904_v46, 0  ;;  %v958_v49 = vsel %vm708_vm5, %v953_v48, 0 }
 0x233   : > { %3488 = vmatpush3.bf16.xpose.msra.mxu0 %v860_v45  ;;  %3489 = vmatprep.mubr.msk.bf16.mxu0 %vm4147_vm3, %v4146_v8 }
 0x234   : > { %3499 = vmatprep.subr.bf16.mxu0 %v4146_v8 }
 0x235   : > { %v1002_v50 = vpop.permute.xlu0 %1001  ;;  %v1051_v51 = vpop.permute.xlu1 %1050 }
 0x236   : > { %3484 = vmatmul.mubr.msk.bf16.vlgmr.msra.gmra.mxu1 %vm708_vm5, %v4435_v31  ;;  %v1007_v52 = vsel %vm708_vm5, %v1002_v50, 0  ;;  %v1056_v53 = vsel %vm708_vm5, %v1051_v51, 0 }
 0x237   : > { %3494 = vmatpush3.bf16.xpose.msra.mxu1 %v909_v47  ;;  %3495 = vmatprep.mubr.msk.bf16.mxu1 %vm4147_vm3, %v4146_v8 }
 0x238   : > { %3505 = vmatprep.subr.bf16.mxu1 %v4146_v8 }
 0x239   : > { %v1195_v54 = vpop.permute.xlu1 %1194 }
 0x23a   : > { %3490 = vmatmul.mubr.msk.bf16.vlgmr.msra.gmra.mxu0 %vm708_vm5, %v4433_v30  ;;  %v1201_v55 = vsel %vm1199_vm6, %v1195_v54, 0 }
 0x23b   : > { %3500 = vmatpush3.bf16.xpose.msra.mxu0 %v958_v49  ;;  %3501 = vmatprep.mubr.msk.bf16.mxu0 %vm4147_vm3, %v4146_v8 }
 0x23c   : > { %3511 = vmatprep.subr.bf16.mxu0 %v4146_v8 }
 0x23e   : > { %3496 = vmatmul.mubr.msk.bf16.vlgmr.msra.gmra.mxu1 %vm708_vm5, %v4443_v34 }
 0x23f   : > { %3506 = vmatpush3.bf16.xpose.msra.mxu1 %v1007_v52  ;;  %3507 = vmatprep.mubr.msk.bf16.mxu1 %vm4147_vm3, %v4146_v8 }
 0x240   : > { %3517 = vmatprep.subr.bf16.mxu1 %v4146_v8 }
 0x242   : > { %3502 = vmatmul.mubr.msk.bf16.vlgmr.msra.gmra.mxu0 %vm708_vm5, %v4441_v33 }
 0x243   : > { %3512 = vmatpush3.bf16.xpose.msra.mxu0 %v1056_v53  ;;  %3513 = vmatprep.mubr.msk.bf16.mxu0 %vm4147_vm3, %v4146_v8 }
 0x244   : > { %3523 = vmatprep.subr.bf16.mxu0 %v4146_v8 }
 0x246   : > { %3508 = vmatmul.mubr.msk.bf16.vlgmr.msra.gmra.mxu1 %vm708_vm5, %v4449_v37 }
 0x247   : > { %3518 = vmatpush3.bf16.msra.mxu1 %v1201_v55  ;;  %3519 = vmatprep.mubr.msk.bf16.mxu1 %vm4147_vm3, %v4146_v8 }
 0x248   : > { %3529 = vmatprep.subr.bf16.mxu1 %v4146_v8 }
 0x24a   : > { %3514 = vmatmul.mubr.msk.bf16.vlgmr.msra.gmra.mxu0 %vm708_vm5, %v4451_v38 }
 0x24b   : > { %3525 = vmatprep.mubr.msk.bf16.mxu0 %vm4147_vm3, %v4146_v8 }
 0x289   : > { %v749_v57 = vpop.f32.mrf.mxu1 }
 0x28a   : > { %v750_v58 = vadd.f32 %v749_v57, %v676_v56 }
 0x28b   : > { %v3473_v59 = vpop.f32.mrf.mxu1 }
 0x28c   : > { %v1098_v60 = vsel %vm708_vm5, %v750_v58, -inf }
 0x28d   : > { %1099 = vmax.xlane.f32.xlu0 %v1098_v60  ;;  %v752_v61 = vpop.f32.mrf.mxu1 }
 0x28f   : > { %v3474_v62 = vpop.f32.mrf.mxu1 }
 0x2f2   : > { %v798_v63 = vpop.f32.mrf.mxu0 }
 0x2f3   : > { %v799_v0 = vadd.f32 %v798_v63, %v676_v56 }
 0x2f4   : > { %v3479_v1 = vpop.f32.mrf.mxu0 }
 0x2f5   : > { %v1101_v2 = vsel %vm708_vm5, %v799_v0, -inf }
 0x2f6   : > { %1102 = vmax.xlane.f32.xlu1 %v1101_v2  ;;  %v801_v3 = vpop.f32.mrf.mxu0  ;;  %v847_v4 = vpop.f32.mrf.mxu1 }
 0x2f7   : > { %v848_v5 = vadd.f32 %v847_v4, %v676_v56 }
 0x2f8   : > { %v3480_v6 = vpop.f32.mrf.mxu0  ;;  %v3485_v7 = vpop.f32.mrf.mxu1 }
 0x2f9   : > { %v1104_v9 = vsel %vm708_vm5, %v848_v5, -inf }
 0x2fa   : > { %v896_v12 = vpop.f32.mrf.mxu0  ;;  %1105 = vmax.xlane.f32.xlu0 %v1104_v9  ;;  %v850_v13 = vpop.f32.mrf.mxu1 }
 0x2fb   : > { %v897_v17 = vadd.f32 %v896_v12, %v676_v56 }
 0x2fc   : > { %v3486_v18 = vpop.f32.mrf.mxu1  ;;  %v3491_v19 = vpop.f32.mrf.mxu0 }
 0x2fd   : > { %v1107_v20 = vsel %vm708_vm5, %v897_v17, -inf }
 0x2fe   : > { %v899_v21 = vpop.f32.mrf.mxu0  ;;  %1108 = vmax.xlane.f32.xlu0 %v1107_v20  ;;  %v945_v22 = vpop.f32.mrf.mxu1 }
 0x2ff   : > { %v4511_v23 = vadd.f32 %v945_v22, %v676_v56 }
 0x300   : > { %v3492_v24 = vpop.f32.mrf.mxu0  ;;  %v3497_v25 = vpop.f32.mrf.mxu1 }
 0x301   : > { %v1110_v26 = vsel %vm708_vm5, %v4511_v23, -inf }
 0x302   : > { %v994_v28 = vpop.f32.mrf.mxu0  ;;  %1111 = vmax.xlane.f32.xlu1 %v1110_v26  ;;  %v948_v29 = vpop.f32.mrf.mxu1 }
 0x303   : > { %v4515_v32 = vadd.f32 %v994_v28, %v676_v56 }
 0x304   : > { %v3498_v35 = vpop.f32.mrf.mxu1  ;;  %v3503_v36 = vpop.f32.mrf.mxu0 }
 0x305   : > { %v1113_v39 = vsel %vm708_vm5, %v4515_v32, -inf }
 0x306   : > { %v997_v40 = vpop.f32.mrf.mxu0  ;;  %1114 = vmax.xlane.f32.xlu0 %v1113_v39  ;;  %v1043_v41 = vpop.f32.mrf.mxu1 }
 0x307   : > { %v1044_v42 = vadd.f32 %v1043_v41, %v676_v56 }
 0x308   : > { %v3504_v43 = vpop.f32.mrf.mxu0  ;;  %v3509_v44 = vpop.f32.mrf.mxu1 }
 0x309   : > { %v1116_v45 = vsel %vm708_vm5, %v1044_v42, -inf }
 0x30a   : > { %v1092_v46 = vpop.f32.mrf.mxu0  ;;  %1117 = vmax.xlane.f32.xlu1 %v1116_v45  ;;  %v1046_v47 = vpop.f32.mrf.mxu1 }
 0x30b   : > { %v1093_v48 = vadd.f32 %v1092_v46, %v676_v56 }
 0x30c   : > { %v3510_v49 = vpop.f32.mrf.mxu1  ;;  %v3515_v50 = vpop.f32.mrf.mxu0 }
 0x30d   : > { %v1119_v51 = vsel %vm708_vm5, %v1093_v48, -inf }
 0x30e   : > { %v1095_v52 = vpop.f32.mrf.mxu0  ;;  %1120 = vmax.xlane.f32.xlu0 %v1119_v51 }
 0x310   : > { %v3516_v53 = vpop.f32.mrf.mxu0 }
 0x316   : > { %v1100_v54 = vpop.xlane.xlu0 %1099 }
 0x317   : > { %v1122_v55 = vsub.f32 %v750_v58, %v1100_v54 }
 0x319   : > { %v1130_v57 = vmul.f32 1.442695, %v1122_v55 }
 0x31b   : > { %1291 = vrot.lane.b32.xlu1 %v4435_v31, %s4152_s24  ;;  %3864 = vpow2.f32 %v1130_v57 }
 0x31f   : > { %1339 = vrot.lane.b32.xlu1 %v4433_v30, %s4152_s24 }
 0x324   : > { %1243 = vrot.lane.b32.xlu0 %v4429_v27, %s4152_s24 }
 0x328   : > { %v4527_v56 = vpop.eup %3864 }
 0x329   : > { %v1146_v59 = vsel %vm708_vm5, %v4527_v56, 0.0 }
 0x343   : > { %1147 = vadd.xlane.f32.xlu1 %v1146_v59 }
 0x37f   : > { %v1103_v60 = vpop.xlane.xlu1 %1102 }
 0x380   : > { %v1123_v61 = vsub.f32 %v799_v0, %v1103_v60 }
 0x382   : > { %v1132_v62 = vmul.f32 1.442695, %v1123_v61 }
 0x383   : > { %v1106_v31 = vpop.xlane.xlu0 %1105 }
 0x384   : > { %3866 = vpow2.f32 %v1132_v62  ;;  %v1124_v63 = vsub.f32 %v848_v5, %v1106_v31 }
 0x386   : > { %v1134_v30 = vmul.f32 1.442695, %v1124_v63 }
 0x387   : > { %v1109_v1 = vpop.xlane.xlu0 %1108 }
 0x388   : > { %3868 = vpow2.f32 %v1134_v30  ;;  %v1125_v27 = vsub.f32 %v897_v17, %v1109_v1 }
 0x38a   : > { %v1136_v2 = vmul.f32 1.442695, %v1125_v27 }
 0x38b   : > { %v1112_v17 = vpop.xlane.xlu1 %1111 }
 0x38c   : > { %3870 = vpow2.f32 %v1136_v2  ;;  %v1126_v18 = vsub.f32 %v4511_v23, %v1112_v17 }
 0x38e   : > { %v1138_v21 = vmul.f32 1.442695, %v1126_v18 }
 0x38f   : > { %v1115_v4 = vpop.xlane.xlu0 %1114 }
 0x390   : > { %v1127_v20 = vsub.f32 %v4515_v32, %v1115_v4  ;;  %3872 = vpow2.f32 %v1138_v21 }
 0x391   : > { %v4531_v58 = vpop.eup %3866 }
 0x392   : > { %v1149_v3 = vsel %vm708_vm5, %v4531_v58, 0.0  ;;  %v1140_v24 = vmul.f32 1.442695, %v1127_v20 }
 0x393   : > { %1150 = vadd.xlane.f32.xlu0 %v1149_v3  ;;  %v1118_v19 = vpop.xlane.xlu1 %1117 }
 0x394   : > { %v1128_v22 = vsub.f32 %v1044_v42, %v1118_v19  ;;  %3874 = vpow2.f32 %v1140_v24 }
 0x395   : > { %v4535_v6 = vpop.eup %3868 }
 0x396   : > { %v1152_v0 = vsel %vm708_vm5, %v4535_v6, 0.0  ;;  %v1142_v25 = vmul.f32 1.442695, %v1128_v22 }
 0x397   : > { %v1121_v7 = vpop.xlane.xlu0 %1120  ;;  %1153 = vadd.xlane.f32.xlu1 %v1152_v0  ;;  %v1292_v29 = vpop.permute.xlu1 %1291 }
 0x398   : > { %v1129_v26 = vsub.f32 %v1093_v48, %v1121_v7  ;;  %3876 = vpow2.f32 %v1142_v25  ;;  %v1297_v46 = vsel %vm1199_vm6, %v1292_v29, 0 }
 0x399   : > { %v4539_v5 = vpop.eup %3870 }
 0x39a   : > { %v1155_v9 = vsel %vm708_vm5, %v4539_v5, 0.0  ;;  %v1144_v28 = vmul.f32 1.442695, %v1129_v26 }
 0x39b   : > { %1156 = vadd.xlane.f32.xlu0 %v1155_v9  ;;  %v1244_v12 = vpop.permute.xlu0 %1243  ;;  %v1340_v35 = vpop.permute.xlu1 %1339 }
 0x39c   : > { %v1249_v13 = vsel %vm1199_vm6, %v1244_v12, 0  ;;  %3878 = vpow2.f32 %v1144_v28  ;;  %v1345_v54 = vsel %vm1199_vm6, %v1340_v35, 0 }
 0x39d   : > { %3524 = vmatpush3.bf16.msra.mxu0 %v1249_v13 }
 0x39e   : > { %3535 = vmatprep.subr.bf16.mxu0 %v4146_v8 }
 0x3a8   : > { %1435 = vrot.lane.b32.xlu1 %v4441_v33, %s4152_s24  ;;  %v4551_v33 = vpop.eup %3872 }
 0x3a9   : > { %v1158_v23 = vsel %vm708_vm5, %v4551_v33, 0.0 }
 0x3b1   : > { %1387 = vrot.lane.b32.xlu0 %v4443_v34, %s4152_s24  ;;  %v4553_v34 = vpop.eup %3874 }
 0x3b2   : > { %v4557_v32 = vpop.eup %3876  ;;  %v1161_v39 = vsel %vm708_vm5, %v4553_v34, 0.0 }
 0x3b3   : > { %v1164_v40 = vsel %vm708_vm5, %v4557_v32, 0.0  ;;  %v4563_v41 = vpop.eup %3878 }
 0x3b4   : > { %v1167_v42 = vsel %vm708_vm5, %v4563_v41, 0.0 }
 0x3cc   : > { %1159 = vadd.xlane.f32.xlu1 %v1158_v23  ;;  %v1148_v36 = vpop.xlane.xlu1 %1147 }
 0x3cd   : > { %3880 = vrcp.f32 %v1148_v36 }
 0x3d0   : > { %1162 = vadd.xlane.f32.xlu0 %v1161_v39  ;;  %1165 = vadd.xlane.f32.xlu1 %v1164_v40 }
 0x3d4   : > { %1168 = vadd.xlane.f32.xlu0 %v1167_v42  ;;  %v3849_v42 = vld [vmem:[%s4372_s11 + $0x8] sm:$0xff]  }
 0x3da   : > { %v3881_v43 = vpop.eup %3880 }
 0x3db   : > { %v1178_v44 = vmul.f32 %v3881_v43, %v4527_v56 }
 0x3dd   : > { %v1186_v45 = vpack.c.bf16 %v1178_v44, %v1178_v44 }
 0x3df   : > { %3520 = vmatmul.mubr.msk.bf16.vlgmr.msra.gmra.mxu1 %vm708_vm5, %v1186_v45  ;;  %v3850_v45 = vld [vmem:[%s4372_s11] sm:$0xff]   ;;  %s4155_s11 = smov 24  }
 0x3e0   : > { %3530 = vmatpush3.bf16.msra.mxu1 %v1297_v46  ;;  %3531 = vmatprep.mubr.msk.bf16.mxu1 %vm4147_vm3, %v4146_v8 }
 0x3e1   : > { %1531 = vrot.lane.b32.xlu1 %v4451_v38, %s4152_s24  ;;  %3541 = vmatprep.subr.bf16.mxu1 %v4146_v8 }
 0x3ea   : > { %1483 = vrot.lane.b32.xlu0 %v4449_v37, %s4152_s24 }
 0x41c   : > { %v1151_v47 = vpop.xlane.xlu0 %1150 }
 0x41d   : > { %3882 = vrcp.f32 %v1151_v47 }
 0x420   : > { %v1154_v48 = vpop.xlane.xlu1 %1153 }
 0x421   : > { %3884 = vrcp.f32 %v1154_v48 }
 0x424   : > { %v1157_v49 = vpop.xlane.xlu0 %1156  ;;  %v1436_v60 = vpop.permute.xlu1 %1435 }
 0x425   : > { %3886 = vrcp.f32 %v1157_v49  ;;  %v1441_v62 = vsel %vm1199_vm6, %v1436_v60, 0 }
 0x428   : > { %v1388_v55 = vpop.permute.xlu0 %1387 }
 0x429   : > { %v1393_v56 = vsel %vm1199_vm6, %v1388_v55, 0 }
 0x42a   : > { %v3883_v50 = vpop.eup %3882 }
 0x42b   : > { %v1179_v51 = vmul.f32 %v3883_v50, %v4531_v58 }
 0x42d   : > { %v1187_v52 = vpack.c.bf16 %v1179_v51, %v1179_v51 }
 0x42e   : > { %v3885_v53 = vpop.eup %3884 }
 0x42f   : > { %3526 = vmatmul.mubr.msk.bf16.vlgmr.msra.gmra.mxu0 %vm708_vm5, %v1187_v52  ;;  %v1180_v38 = vmul.f32 %v3885_v53, %v4535_v6 }
 0x430   : > { %3536 = vmatpush3.bf16.msra.mxu0 %v1345_v54  ;;  %3537 = vmatprep.mubr.msk.bf16.mxu0 %vm4147_vm3, %v4146_v8 }
 0x431   : > { %v1188_v37 = vpack.c.bf16 %v1180_v38, %v1180_v38  ;;  %3547 = vmatprep.subr.bf16.mxu0 %v4146_v8 }
 0x432   : > { %v3887_v57 = vpop.eup %3886 }
 0x433   : > { %3532 = vmatmul.mubr.msk.bf16.vlgmr.msra.gmra.mxu1 %vm708_vm5, %v1188_v37  ;;  %v1181_v59 = vmul.f32 %v3887_v57, %v4539_v5 }
 0x434   : > { %3542 = vmatpush3.bf16.msra.mxu1 %v1393_v56  ;;  %3543 = vmatprep.mubr.msk.bf16.mxu1 %vm4147_vm3, %v4146_v8 }
 0x435   : > { %v1189_v61 = vpack.c.bf16 %v1181_v59, %v1181_v59  ;;  %3553 = vmatprep.subr.bf16.mxu1 %v4146_v8 }
 0x437   : > { %3538 = vmatmul.mubr.msk.bf16.vlgmr.msra.gmra.mxu0 %vm708_vm5, %v1189_v61 }
 0x438   : > { %3548 = vmatpush3.bf16.msra.mxu0 %v1441_v62  ;;  %3549 = vmatprep.mubr.msk.bf16.mxu0 %vm4147_vm3, %v4146_v8 }
 0x439   : > { %3559 = vmatprep.subr.bf16.mxu0 %v4146_v8 }
 0x455   : > { %v1160_v31 = vpop.xlane.xlu1 %1159 }
 0x456   : > { %3888 = vrcp.f32 %v1160_v31 }
 0x459   : > { %v1163_v63 = vpop.xlane.xlu0 %1162  ;;  %v1166_v30 = vpop.xlane.xlu1 %1165 }
 0x45a   : > { %3890 = vrcp.f32 %v1163_v63 }
 0x45b   : > { %3892 = vrcp.f32 %v1166_v30 }
 0x45d   : > { %v1169_v1 = vpop.xlane.xlu0 %1168  ;;  %v1532_v5 = vpop.permute.xlu1 %1531 }
 0x45e   : > { %3894 = vrcp.f32 %v1169_v1  ;;  %v1537_v17 = vsel %vm1199_vm6, %v1532_v5, 0 }
 0x461   : > { %v1484_v58 = vpop.permute.xlu0 %1483 }
 0x462   : > { %v1489_v0 = vsel %vm1199_vm6, %v1484_v58, 0 }
 0x463   : > { %v3889_v27 = vpop.eup %3888 }
 0x464   : > { %v1182_v2 = vmul.f32 %v3889_v27, %v4551_v33 }
 0x466   : > { %v1190_v3 = vpack.c.bf16 %v1182_v2, %v1182_v2 }
 0x467   : > { %v3891_v4 = vpop.eup %3890 }
 0x468   : > { %v3893_v6 = vpop.eup %3892  ;;  %3544 = vmatmul.mubr.msk.bf16.vlgmr.msra.gmra.mxu1 %vm708_vm5, %v1190_v3  ;;  %v1183_v7 = vmul.f32 %v3891_v4, %v4553_v34 }
 0x469   : > { %3554 = vmatpush3.bf16.msra.mxu1 %v1489_v0  ;;  %3555 = vmatprep.mubr.msk.bf16.mxu1 %vm4147_vm3, %v4146_v8  ;;  %v1184_v12 = vmul.f32 %v3893_v6, %v4557_v32 }
 0x46a   : > { %v1191_v9 = vpack.c.bf16 %v1183_v7, %v1183_v7  ;;  %3565 = vmatprep.subr.bf16.mxu1 %v4146_v8 }
 0x46b   : > { %v3895_v13 = vpop.eup %3894  ;;  %v1192_v18 = vpack.c.bf16 %v1184_v12, %v1184_v12 }
 0x46c   : > { %3550 = vmatmul.mubr.msk.bf16.vlgmr.msra.gmra.mxu0 %vm708_vm5, %v1191_v9  ;;  %v1185_v19 = vmul.f32 %v3895_v13, %v4563_v41  ;;  %v1618_v13 = vsub.s32 1, %v4413_v14 }
 0x46d   : > { %3560 = vmatpush3.bf16.msra.mxu0 %v1537_v17  ;;  %3561 = vmatprep.mubr.msk.bf16.mxu0 %vm4147_vm3, %v4146_v8 }
 0x46e   : > { %3573 = vmatprep.subr.bf16.mxu0 %v4146_v8  ;;  %v1193_v20 = vpack.c.bf16 %v1185_v19, %v1185_v19  ;;  %v1619_v17 = vrot.slane %v4417_v16, %v1618_v13 }
 0x470   : > { %3556 = vmatmul.mubr.msk.bf16.vlgmr.msra.gmra.mxu1 %vm708_vm5, %v1192_v18 }
 0x471   : > { %3569 = vmatprep.mubr.msk.bf16.mxu1 %vm4147_vm3, %v4146_v8  ;;  %3566 = vmatpush3.bf16.msra.mxu1 %v3849_v42  ;;  %v3852_v42 = vld [vmem:[%s4382_s10] sm:$0xff]  }
 0x472   : > { %3567 = vmatprep.subr.bf16.mxu1 %v4146_v8 }
 0x474   : > { %3562 = vmatmul.mubr.msk.bf16.vlgmr.msra.gmra.mxu0 %vm708_vm5, %v1193_v20 }
 0x475   : > { %3577 = vmatprep.mubr.msk.bf16.mxu0 %vm4147_vm3, %v4146_v8  ;;  %3568 = vmatpush3.bf16.msra.mxu1 %v3850_v45  ;;  %v3855_v45 = vld [vmem:[%s4377_s21] sm:$0xff]  }
 0x476   : > { %3581 = vmatprep.subr.bf16.mxu1 %v4146_v8 }
 0x49f   : > { %v1237_v21 = vpop.f32.mrf.mxu1 }
 0x4a1   : > { %v3521_v22 = vpop.f32.mrf.mxu1 }
 0x4a3   : > { %v1240_v24 = vpop.f32.mrf.mxu1 }
 0x4a5   : > { %v3522_v25 = vpop.f32.mrf.mxu1 }
 0x4ef   : > { %v1285_v26 = vpop.f32.mrf.mxu0 }
 0x4f1   : > { %v3527_v28 = vpop.f32.mrf.mxu0 }
 0x4f3   : > { %v1288_v29 = vpop.f32.mrf.mxu0  ;;  %v1333_v33 = vpop.f32.mrf.mxu1 }
 0x4f5   : > { %v3528_v35 = vpop.f32.mrf.mxu0  ;;  %v3533_v34 = vpop.f32.mrf.mxu1 }
 0x4f7   : > { %v1336_v23 = vpop.f32.mrf.mxu1  ;;  %v1381_v32 = vpop.f32.mrf.mxu0 }
 0x4f9   : > { %v3534_v36 = vpop.f32.mrf.mxu1  ;;  %v3539_v39 = vpop.f32.mrf.mxu0 }
 0x4fb   : > { %v1384_v40 = vpop.f32.mrf.mxu0 }
 0x4fd   : > { %v3540_v41 = vpop.f32.mrf.mxu0 }
 0x528   : > { %v1429_v43 = vpop.f32.mrf.mxu1 }
 0x52a   : > { %v3545_v44 = vpop.f32.mrf.mxu1 }
 0x52b   : > { %v3854_v44 = vld [vmem:[%s4377_s21 + $0x8] sm:$0xff]  }
 0x52c   : > { %v1432_v46 = vpop.f32.mrf.mxu1  ;;  %v1477_v47 = vpop.f32.mrf.mxu0  ;;  %3574 = vmatpush3.bf16.msra.mxu0 %v3854_v44 }
 0x52d   : > { %v3817_v48 = vpack.i.bf16 %v1477_v47, %v1285_v26  ;;  %3575 = vmatprep.subr.bf16.mxu0 %v4146_v8 }
 0x52e   : > { %v3546_v49 = vpop.f32.mrf.mxu1  ;;  %v3551_v50 = vpop.f32.mrf.mxu0 }
 0x52f   : > { %3818 = vrot.lane.b32.xlu0 %v3817_v48, %s4153_s23 }
 0x530   : > { %v1480_v51 = vpop.f32.mrf.mxu0  ;;  %v1525_v52 = vpop.f32.mrf.mxu1  ;;  %3576 = vmatpush3.bf16.msra.mxu0 %v3855_v45 }
 0x531   : > { %v3822_v53 = vpack.i.bf16 %v1525_v52, %v1333_v33  ;;  %3589 = vmatprep.subr.bf16.mxu0 %v4146_v8  ;;  %v1707_v52 = vsub.s32 2, %v4413_v14 }
 0x532   : > { %v3552_v54 = vpop.f32.mrf.mxu0  ;;  %v3557_v38 = vpop.f32.mrf.mxu1 }
 0x533   : > { %3823 = vrot.lane.b32.xlu1 %v3822_v53, %s4154_s20  ;;  %v1708_v38 = vrot.slane %v4417_v16, %v1707_v52 }
 0x534   : > { %v1528_v55 = vpop.f32.mrf.mxu1  ;;  %v1573_v37 = vpop.f32.mrf.mxu0 }
 0x535   : > { %v3827_v57 = vpack.i.bf16 %v1573_v37, %v1381_v32  ;;  %v1713_v55 = vsub.s32 3, %v4413_v14 }
 0x536   : > { %v3558_v56 = vpop.f32.mrf.mxu1  ;;  %v3563_v59 = vpop.f32.mrf.mxu0 }
 0x537   : > { %3828 = vrot.lane.b32.xlu0 %v3827_v57, %s4155_s11  ;;  %v1714_v59 = vrot.slane %v4417_v16, %v1713_v55 }
 0x538   : > { %v1576_v60 = vpop.f32.mrf.mxu0 }
 0x53a   : > { %v3564_v61 = vpop.f32.mrf.mxu0 }
 0x5a1   : > { %v3819_v62 = vpop.permute.xlu0 %3818 }
 0x5a2   : > { %v3821_v63 = vunpack.i.h.bf16 %v3819_v62  ;;  %v3820_v30 = vunpack.i.l.bf16 %v3819_v62 }
 0x5a4   : > { %v1603_v58 = vsel %vm708_vm5, %v1237_v21, %v3820_v30  ;;  %v1604_v3 = vsel %vm708_vm5, %v1429_v43, %v3821_v63  ;;  %v3853_v43 = vld [vmem:[#allocation3] sm:$0xff]   ;;  %v1788_v63 = vsub.s32 5, %v4413_v14 }
 0x5a5   : > { %v3824_v31 = vpop.permute.xlu1 %3823 }
 0x5a6   : > { %v3826_v1 = vunpack.i.h.bf16 %v3824_v31  ;;  %v3825_v27 = vunpack.i.l.bf16 %v3824_v31  ;;  %v1789_v30 = vrot.slane %v4417_v16, %v1788_v63 }
 0x5a8   : > { %v1607_v0 = vsel %vm1605_vm7, %v1604_v3, %v3826_v1  ;;  %v1606_v7 = vsel %vm1605_vm7, %v1603_v58, %v3825_v27 }
 0x5a9   : > { %v3829_v2 = vpop.permute.xlu0 %3828 }
 0x5aa   : > { %v3831_v4 = vunpack.i.h.bf16 %v3829_v2  ;;  %v3830_v6 = vunpack.i.l.bf16 %v3829_v2 }
 0x5ac   : > { %v1609_v5 = vsel %vm1608_vm8, %v1606_v7, %v3830_v6  ;;  %v1610_v9 = vsel %vm1608_vm8, %v1607_v0, %v3831_v4 }
 0x5ad   : > { %v1611_v12 = vpack.c.bf16 %v1610_v9, %v1609_v5 }
 0x5af   : > { %3570 = vmatmul.mubr.msk.bf16.vlgmr.msra.gmra.mxu1 %vm631_vm4, %v1611_v12  ;;  %v1724_v12 = vsub.s32 4, %v4413_v14 }
 0x5b0   : > { %3585 = vmatprep.mubr.msk.bf16.mxu1 %vm4147_vm3, %v4146_v8 }
 0x66f   : > { %v1669_v18 = vpop.f32.mrf.mxu1 }
 0x670   : > { %v1670_v19 = vadd.f32 %v1669_v18, %v1619_v17  ;;  %v1725_v18 = vrot.slane %v4417_v16, %v1724_v12 }
 0x671   : > { %v3571_v20 = vpop.f32.mrf.mxu1 }
 0x672   : > { %v1676_v21 = vadd.f32 %v1670_v19, %v4400_v10 }
 0x673   : > { %v1672_v22 = vpop.f32.mrf.mxu1 }
 0x674   : > { %v1673_v24 = vadd.f32 %v1672_v22, %v1619_v17  ;;  %v1678_v25 = vsel %vm631_vm4, %v1676_v21, 0.0 }
 0x675   : > { %1679 = vadd.xlane.f32.xlu1 %v1678_v25  ;;  %v3572_v26 = vpop.f32.mrf.mxu1 }
 0x676   : > { %v1677_v28 = vadd.f32 %v1673_v24, %v4402_v11  ;;  %v3851_v11 = vld [vmem:[%s4382_s10 + $0x8] sm:$0xff]  }
 0x677   : > { %3582 = vmatpush3.bf16.msra.mxu1 %v3851_v11 }
 0x678   : > { %v1681_v29 = vsel %vm631_vm4, %v1677_v28, 0.0  ;;  %3583 = vmatprep.subr.bf16.mxu1 %v4146_v8 }
 0x679   : > { %1682 = vadd.xlane.f32.xlu0 %v1681_v29 }
 0x67b   : > { %3584 = vmatpush3.bf16.msra.mxu1 %v3852_v42 }
 0x67c   : > { %3595 = vmatprep.subr.bf16.mxu1 %v4146_v8 }
 0x67e   : > { %3586 = vmatmul.mubr.msk.bf16.vlgmr.msra.gmra.mxu1 %vm631_vm4, %v3853_v43 }
 0x67f   : > { %3597 = vmatprep.mubr.msk.bf16.mxu1 %vm4147_vm3, %v4146_v8 }
 0x6fe   : > { %v1680_v33 = vpop.xlane.xlu1 %1679 }
 0x6ff   : > { %v1685_v35 = vmul.f32 0.03125, %v1680_v33 }
 0x701   : > { %v1687_v34 = vsub.f32 %v1676_v21, %v1685_v35 }
 0x702   : > { %v1683_v23 = vpop.xlane.xlu0 %1682 }
 0x703   : > { %v1686_v32 = vmul.f32 0.03125, %v1683_v23  ;;  %v1689_v36 = vmul.f32 %v1687_v34, %v1687_v34 }
 0x705   : > { %v1688_v10 = vsub.f32 %v1677_v28, %v1686_v32  ;;  %v1691_v39 = vsel %vm631_vm4, %v1689_v36, 0.0 }
 0x706   : > { %1692 = vadd.xlane.f32.xlu0 %v1691_v39 }
 0x707   : > { %v1690_v40 = vmul.f32 %v1688_v10, %v1688_v10 }
 0x709   : > { %v1694_v41 = vsel %vm631_vm4, %v1690_v40, 0.0 }
 0x70a   : > { %1695 = vadd.xlane.f32.xlu1 %v1694_v41 }
 0x73e   : > { %v1844_v1 = vpop.f32.mrf.mxu1 }
 0x73f   : > { %v1845_v27 = vadd.f32 %v1844_v1, %v1789_v30 }
 0x740   : > { %v3587_v2 = vpop.f32.mrf.mxu1 }
 0x741   : > { %1881 = vrot.lane.b32.xlu0 %v1845_v27, %s4149_s26  ;;  %1887 = vrot.lane.b32.xlu1 %v1845_v27, %s4150_s30  ;;  %v1899_v58 = vpack.c.bf16 %v1845_v27, %v1845_v27 }
 0x742   : > { %v1847_v3 = vpop.f32.mrf.mxu1 }
 0x743   : > { %v1848_v4 = vadd.f32 %v1847_v3, %v1789_v30  ;;  %v1911_v6 = vsel %vm708_vm5, %v1899_v58, 0 }
 0x744   : > { %v3588_v0 = vpop.f32.mrf.mxu1 }
 0x745   : > { %1893 = vrot.lane.b32.xlu0 %v1845_v27, %s4148_s16  ;;  %v4706_v36 = vpack.c.bf16 %v1848_v4, %v1848_v4 }
 0x747   : > { %v2095_v41 = vsel %vm708_vm5, %v4706_v36, 0 }
 0x78f   : > { %v1693_v46 = vpop.xlane.xlu0 %1692 }
 0x790   : > { %v1697_v47 = vmul.f32 0.03125, %v1693_v46 }
 0x792   : > { %v1699_v48 = vadd.f32 1e-05, %v1697_v47 }
 0x793   : > { %v1696_v49 = vpop.xlane.xlu1 %1695 }
 0x794   : > { %3896 = vrsqrt.f32 %v1699_v48  ;;  %v1698_v50 = vmul.f32 0.03125, %v1696_v49 }
 0x796   : > { %v1700_v51 = vadd.f32 1e-05, %v1698_v50 }
 0x798   : > { %3898 = vrsqrt.f32 %v1700_v51 }
 0x7a1   : > { %v3897_v53 = vpop.eup %3896 }
 0x7a2   : > { %v1703_v54 = vmul.f32 %v3897_v53, %v1687_v34 }
 0x7a4   : > { %v1709_v56 = vmul.f32 %v1708_v38, %v1703_v54 }
 0x7a5   : > { %v3899_v37 = vpop.eup %3898 }
 0x7a6   : > { %v1704_v57 = vmul.f32 %v3899_v37, %v1688_v10  ;;  %v4660_v61 = vadd.f32 %v1714_v59, %v1709_v56 }
 0x7a8   : > { %v1710_v60 = vmul.f32 %v1708_v38, %v1704_v57 }
 0x7aa   : > { %v4662_v62 = vadd.f32 %v1714_v59, %v1710_v60 }
 0x7ac   : > { %v1717_v31 = vpack.c.bf16 %v4662_v62, %v4660_v61 }
 0x7ae   : > { %3578 = vmatmul.mubr.msk.bf16.vlgmr.msra.gmra.mxu0 %vm631_vm4, %v1717_v31 }
 0x7af   : > { %3591 = vmatprep.mubr.msk.bf16.mxu0 %vm4147_vm3, %v4146_v8  ;;  %3590 = vmatpush3.bf16.xpose.msra.mxu0 %v1911_v6 }
 0x7b0   : > { %3601 = vmatprep.subr.bf16.mxu0 %v4146_v8 }
 0x7b3   : > { %v1882_v7 = vpop.permute.xlu0 %1881  ;;  %v1888_v17 = vpop.permute.xlu1 %1887 }
 0x7b4   : > { %v1900_v5 = vpack.c.bf16 %v1882_v7, %v1882_v7  ;;  %v4682_v19 = vpack.c.bf16 %v1888_v17, %v1888_v17 }
 0x7b6   : > { %v1957_v9 = vsel %vm708_vm5, %v1900_v5, 0  ;;  %v2003_v25 = vsel %vm708_vm5, %v4682_v19, 0 }
 0x7b7   : > { %3596 = vmatpush3.bf16.xpose.msra.mxu1 %v1957_v9  ;;  %v1894_v29 = vpop.permute.xlu0 %1893 }
 0x7b8   : > { %3607 = vmatprep.subr.bf16.mxu1 %v4146_v8  ;;  %v4701_v33 = vpack.c.bf16 %v1894_v29, %v1894_v29 }
 0x7ba   : > { %v2049_v32 = vsel %vm708_vm5, %v4701_v33, 0 }
 0x86e   : > { %v1775_v20 = vpop.f32.mrf.mxu0 }
 0x86f   : > { %v1776_v21 = vadd.f32 %v1775_v20, %v1725_v18 }
 0x870   : > { %v3579_v22 = vpop.f32.mrf.mxu0 }
 0x871   : > { %v1871_v24 = vpack.c.bf16 %v1776_v21, %v1776_v21  ;;  %1853 = vrot.lane.b32.xlu1 %v1776_v21, %s4149_s26  ;;  %1865 = vrot.lane.b32.xlu0 %v1776_v21, %s4148_s16 }
 0x872   : > { %v1778_v26 = vpop.f32.mrf.mxu0 }
 0x873   : > { %3592 = vmatmul.mubr.msk.bf16.vlgmr.msra.gmra.mxu0 %vm708_vm5, %v1871_v24  ;;  %v1779_v16 = vadd.f32 %v1778_v26, %v1725_v18 }
 0x874   : > { %v3580_v28 = vpop.f32.mrf.mxu0  ;;  %3602 = vmatpush3.bf16.xpose.msra.mxu0 %v2003_v25  ;;  %3603 = vmatprep.mubr.msk.bf16.mxu0 %vm4147_vm3, %v4146_v8 }
 0x875   : > { %1859 = vrot.lane.b32.xlu1 %v1776_v21, %s4150_s30  ;;  %1889 = vrot.lane.b32.xlu0 %v1848_v4, %s4150_s30  ;;  %v1875_v48 = vpack.c.bf16 %v1779_v16, %v1779_v16 }
 0x876   : > { %3613 = vmatprep.subr.bf16.mxu0 %v4146_v8 }
 0x879   : > { %1895 = vrot.lane.b32.xlu0 %v1848_v4, %s4148_s16  ;;  %1883 = vrot.lane.b32.xlu1 %v1848_v4, %s4149_s26 }
 0x87d   : > { %1867 = vrot.lane.b32.xlu0 %v1779_v16, %s4148_s16  ;;  %1855 = vrot.lane.b32.xlu1 %v1779_v16, %s4149_s26 }
 0x881   : > { %2372 = vrot.lane.b32.xlu0 %v1899_v58, %s4151_s29  ;;  %1861 = vrot.lane.b32.xlu1 %v1779_v16, %s4150_s30 }
 0x885   : > { %2421 = vrot.lane.b32.xlu1 %v1900_v5, %s4151_s29 }
 0x8e3   : > { %v1854_v35 = vpop.permute.xlu1 %1853  ;;  %v1866_v34 = vpop.permute.xlu0 %1865 }
 0x8e4   : > { %v1872_v23 = vpack.c.bf16 %v1854_v35, %v1854_v35  ;;  %v1874_v43 = vpack.c.bf16 %v1866_v34, %v1866_v34 }
 0x8e6   : > { %3598 = vmatmul.mubr.msk.bf16.vlgmr.msra.gmra.mxu1 %vm708_vm5, %v1872_v23 }
 0x8e7   : > { %3608 = vmatpush3.bf16.xpose.msra.mxu1 %v2049_v32  ;;  %v1860_v10 = vpop.permute.xlu1 %1859  ;;  %v1890_v39 = vpop.permute.xlu0 %1889  ;;  %3609 = vmatprep.mubr.msk.bf16.mxu1 %vm4147_vm3, %v4146_v8 }
 0x8e8   : > { %v1873_v40 = vpack.c.bf16 %v1860_v10, %v1860_v10  ;;  %3619 = vmatprep.subr.bf16.mxu1 %v4146_v8  ;;  %v4719_v45 = vpack.c.bf16 %v1890_v39, %v1890_v39 }
 0x8ea   : > { %3604 = vmatmul.mubr.msk.bf16.vlgmr.msra.gmra.mxu0 %vm708_vm5, %v1873_v40  ;;  %v2187_v50 = vsel %vm708_vm5, %v4719_v45, 0 }
 0x8eb   : > { %3614 = vmatpush3.bf16.xpose.msra.mxu0 %v2095_v41  ;;  %v1896_v11 = vpop.permute.xlu0 %1895  ;;  %v1884_v42 = vpop.permute.xlu1 %1883  ;;  %3615 = vmatprep.mubr.msk.bf16.mxu0 %vm4147_vm3, %v4146_v8 }
 0x8ec   : > { %v4716_v44 = vpack.c.bf16 %v1884_v42, %v1884_v42  ;;  %3625 = vmatprep.subr.bf16.mxu0 %v4146_v8  ;;  %v4729_v51 = vpack.c.bf16 %v1896_v11, %v1896_v11 }
 0x8ee   : > { %v2141_v46 = vsel %vm708_vm5, %v4716_v44, 0  ;;  %3610 = vmatmul.mubr.msk.bf16.vlgmr.msra.gmra.mxu1 %vm708_vm5, %v1874_v43  ;;  %v2233_v38 = vsel %vm708_vm5, %v4729_v51, 0 }
 0x8ef   : > { %3620 = vmatpush3.bf16.xpose.msra.mxu1 %v2141_v46  ;;  %v1856_v47 = vpop.permute.xlu1 %1855  ;;  %3621 = vmatprep.mubr.msk.bf16.mxu1 %vm4147_vm3, %v4146_v8  ;;  %v1868_v49 = vpop.permute.xlu0 %1867 }
 0x8f0   : > { %3631 = vmatprep.subr.bf16.mxu1 %v4146_v8  ;;  %v1876_v53 = vpack.c.bf16 %v1856_v47, %v1856_v47  ;;  %v1878_v60 = vpack.c.bf16 %v1868_v49, %v1868_v49 }
 0x8f2   : > { %3616 = vmatmul.mubr.msk.bf16.vlgmr.msra.gmra.mxu0 %vm708_vm5, %v1875_v48 }
 0x8f3   : > { %3626 = vmatpush3.bf16.xpose.msra.mxu0 %v2187_v50  ;;  %3627 = vmatprep.mubr.msk.bf16.mxu0 %vm4147_vm3, %v4146_v8  ;;  %v1862_v54 = vpop.permute.xlu1 %1861  ;;  %v2373_v37 = vpop.permute.xlu0 %2372 }
 0x8f4   : > { %3637 = vmatprep.subr.bf16.mxu0 %v4146_v8  ;;  %v1877_v57 = vpack.c.bf16 %v1862_v54, %v1862_v54  ;;  %v2378_v59 = vsel %vm1199_vm6, %v2373_v37, 0 }
 0x8f6   : > { %3622 = vmatmul.mubr.msk.bf16.vlgmr.msra.gmra.mxu1 %vm708_vm5, %v1876_v53 }
 0x8f7   : > { %3632 = vmatpush3.bf16.xpose.msra.mxu1 %v2233_v38  ;;  %3633 = vmatprep.mubr.msk.bf16.mxu1 %vm4147_vm3, %v4146_v8  ;;  %v2422_v56 = vpop.permute.xlu1 %2421 }
 0x8f8   : > { %3643 = vmatprep.subr.bf16.mxu1 %v4146_v8  ;;  %v2427_v31 = vsel %vm1199_vm6, %v2422_v56, 0 }
 0x8fa   : > { %3628 = vmatmul.mubr.msk.bf16.vlgmr.msra.gmra.mxu0 %vm708_vm5, %v1877_v57 }
 0x8fb   : > { %3638 = vmatpush3.bf16.msra.mxu0 %v2378_v59  ;;  %3639 = vmatprep.mubr.msk.bf16.mxu0 %vm4147_vm3, %v4146_v8 }
 0x8fc   : > { %3649 = vmatprep.subr.bf16.mxu0 %v4146_v8 }
 0x8fe   : > { %3634 = vmatmul.mubr.msk.bf16.vlgmr.msra.gmra.mxu1 %vm708_vm5, %v1878_v60 }
 0x8ff   : > { %3644 = vmatpush3.bf16.msra.mxu1 %v2427_v31  ;;  %3645 = vmatprep.mubr.msk.bf16.mxu1 %vm4147_vm3, %v4146_v8 }
 0x900   : > { %3655 = vmatprep.subr.bf16.mxu1 %v4146_v8 }
 0x933   : > { %v1947_v63 = vpop.f32.mrf.mxu0 }
 0x934   : > { %v2275_v30 = vsel %vm708_vm5, %v1947_v63, -inf }
 0x935   : > { %v3593_v1 = vpop.f32.mrf.mxu0  ;;  %2276 = vmax.xlane.f32.xlu1 %v2275_v30 }
 0x937   : > { %v1950_v27 = vpop.f32.mrf.mxu0 }
 0x939   : > { %v3594_v2 = vpop.f32.mrf.mxu0 }
 0x9a6   : > { %v1993_v58 = vpop.f32.mrf.mxu1 }
 0x9a7   : > { %v2278_v3 = vsel %vm708_vm5, %v1993_v58, -inf }
 0x9a8   : > { %2279 = vmax.xlane.f32.xlu0 %v2278_v3  ;;  %v3599_v4 = vpop.f32.mrf.mxu1 }
 0x9aa   : > { %v1996_v6 = vpop.f32.mrf.mxu1  ;;  %v2039_v0 = vpop.f32.mrf.mxu0 }
 0x9ab   : > { %v2281_v7 = vsel %vm708_vm5, %v2039_v0, -inf }
 0x9ac   : > { %v3605_v5 = vpop.f32.mrf.mxu0  ;;  %2282 = vmax.xlane.f32.xlu0 %v2281_v7  ;;  %v3600_v9 = vpop.f32.mrf.mxu1 }
 0x9ae   : > { %v2042_v17 = vpop.f32.mrf.mxu0  ;;  %v2085_v18 = vpop.f32.mrf.mxu1 }
 0x9af   : > { %v2284_v20 = vsel %vm708_vm5, %v2085_v18, -inf }
 0x9b0   : > { %v3606_v21 = vpop.f32.mrf.mxu0  ;;  %2285 = vmax.xlane.f32.xlu1 %v2284_v20  ;;  %v3611_v22 = vpop.f32.mrf.mxu1 }
 0x9b2   : > { %v2088_v24 = vpop.f32.mrf.mxu1  ;;  %v2131_v25 = vpop.f32.mrf.mxu0 }
 0x9b3   : > { %v2287_v26 = vsel %vm708_vm5, %v2131_v25, -inf }
 0x9b4   : > { %v3617_v28 = vpop.f32.mrf.mxu0  ;;  %2288 = vmax.xlane.f32.xlu0 %v2287_v26  ;;  %v3612_v16 = vpop.f32.mrf.mxu1 }
 0x9b6   : > { %v2134_v29 = vpop.f32.mrf.mxu0  ;;  %v2177_v35 = vpop.f32.mrf.mxu1 }
 0x9b7   : > { %v2290_v34 = vsel %vm708_vm5, %v2177_v35, -inf }
 0x9b8   : > { %v3618_v23 = vpop.f32.mrf.mxu0  ;;  %2291 = vmax.xlane.f32.xlu1 %v2290_v34  ;;  %v3623_v32 = vpop.f32.mrf.mxu1 }
 0x9ba   : > { %v2180_v10 = vpop.f32.mrf.mxu1  ;;  %v2223_v39 = vpop.f32.mrf.mxu0 }
 0x9bb   : > { %v2293_v40 = vsel %vm708_vm5, %v2223_v39, -inf }
 0x9bc   : > { %v3629_v41 = vpop.f32.mrf.mxu0  ;;  %2294 = vmax.xlane.f32.xlu0 %v2293_v40  ;;  %v3624_v11 = vpop.f32.mrf.mxu1 }
 0x9be   : > { %v2226_v42 = vpop.f32.mrf.mxu0  ;;  %v2269_v43 = vpop.f32.mrf.mxu1 }
 0x9bf   : > { %v2296_v47 = vsel %vm708_vm5, %v2269_v43, -inf  ;;  %v2277_v53 = vpop.xlane.xlu1 %2276 }
 0x9c0   : > { %v3630_v46 = vpop.f32.mrf.mxu0  ;;  %2297 = vmax.xlane.f32.xlu1 %v2296_v47  ;;  %v3635_v48 = vpop.f32.mrf.mxu1  ;;  %v2299_v54 = vsub.f32 %v1947_v63, %v2277_v53 }
 0x9c2   : > { %v2272_v49 = vpop.f32.mrf.mxu1  ;;  %v2307_v38 = vmul.f32 1.442695, %v2299_v54 }
 0x9c4   : > { %v3636_v50 = vpop.f32.mrf.mxu1  ;;  %3900 = vpow2.f32 %v2307_v38 }
 0x9d1   : > { %2470 = vrot.lane.b32.xlu1 %v4682_v19, %s4151_s29  ;;  %v3901_v37 = vpop.eup %3900 }
 0x9d2   : > { %2519 = vrot.lane.b32.xlu0 %v4701_v33, %s4151_s29  ;;  %v2323_v57 = vsel %vm708_vm5, %v3901_v37, 0.0 }
 0x9f1   : > { %2324 = vadd.xlane.f32.xlu0 %v2323_v57 }
 0xa31   : > { %v2280_v56 = vpop.xlane.xlu0 %2279 }
 0xa32   : > { %v2300_v59 = vsub.f32 %v1993_v58, %v2280_v56 }
 0xa34   : > { %v2309_v60 = vmul.f32 1.442695, %v2300_v59 }
 0xa35   : > { %v2283_v31 = vpop.xlane.xlu0 %2282 }
 0xa36   : > { %3902 = vpow2.f32 %v2309_v60  ;;  %v2301_v30 = vsub.f32 %v2039_v0, %v2283_v31 }
 0xa38   : > { %v2311_v1 = vmul.f32 1.442695, %v2301_v30 }
 0xa39   : > { %v2286_v2 = vpop.xlane.xlu1 %2285 }
 0xa3a   : > { %3904 = vpow2.f32 %v2311_v1  ;;  %v2302_v58 = vsub.f32 %v2085_v18, %v2286_v2 }
 0xa3c   : > { %v2313_v0 = vmul.f32 1.442695, %v2302_v58 }
 0xa3d   : > { %v2289_v3 = vpop.xlane.xlu0 %2288 }
 0xa3e   : > { %v2303_v6 = vsub.f32 %v2131_v25, %v2289_v3  ;;  %3906 = vpow2.f32 %v2313_v0 }
 0xa40   : > { %v2315_v17 = vmul.f32 1.442695, %v2303_v6 }
 0xa41   : > { %v2292_v4 = vpop.xlane.xlu1 %2291 }
 0xa42   : > { %v2304_v7 = vsub.f32 %v2177_v35, %v2292_v4  ;;  %3908 = vpow2.f32 %v2315_v17 }
 0xa43   : > { %v3903_v19 = vpop.eup %3902 }
 0xa44   : > { %v2326_v27 = vsel %vm708_vm5, %v3903_v19, 0.0  ;;  %v2317_v21 = vmul.f32 1.442695, %v2304_v7 }
 0xa45   : > { %2327 = vadd.xlane.f32.xlu1 %v2326_v27  ;;  %v2295_v5 = vpop.xlane.xlu0 %2294 }
 0xa46   : > { %v2305_v20 = vsub.f32 %v2223_v39, %v2295_v5  ;;  %3910 = vpow2.f32 %v2317_v21 }
 0xa47   : > { %v4765_v33 = vpop.eup %3904 }
 0xa48   : > { %v2329_v63 = vsel %vm708_vm5, %v4765_v33, 0.0  ;;  %v2319_v24 = vmul.f32 1.442695, %v2305_v20 }
 0xa49   : > { %2330 = vadd.xlane.f32.xlu0 %v2329_v63  ;;  %v2298_v9 = vpop.xlane.xlu1 %2297  ;;  %v2520_v18 = vpop.permute.xlu0 %2519 }
 0xa4a   : > { %v2306_v22 = vsub.f32 %v2269_v43, %v2298_v9  ;;  %3912 = vpow2.f32 %v2319_v24  ;;  %v2525_v53 = vsel %vm1199_vm6, %v2520_v18, 0 }
 0xa4d   : > { %v2471_v41 = vpop.permute.xlu1 %2470 }
 0xa4e   : > { %v2476_v42 = vsel %vm1199_vm6, %v2471_v41, 0 }
 0xa56   : > { %2568 = vrot.lane.b32.xlu1 %v4706_v36, %s4151_s29  ;;  %v2321_v36 = vmul.f32 1.442695, %v2306_v22 }
 0xa58   : > { %3914 = vpow2.f32 %v2321_v36 }
 0xa5f   : > { %2617 = vrot.lane.b32.xlu0 %v4716_v44, %s4151_s29  ;;  %v3907_v44 = vpop.eup %3906 }
 0xa60   : > { %v4773_v26 = vpop.eup %3908  ;;  %v2332_v25 = vsel %vm708_vm5, %v3907_v44, 0.0 }
 0xa61   : > { %v4776_v28 = vpop.eup %3910  ;;  %v2335_v35 = vsel %vm708_vm5, %v4773_v26, 0.0 }
 0xa62   : > { %v4778_v29 = vpop.eup %3912  ;;  %v2338_v34 = vsel %vm708_vm5, %v4776_v28, 0.0 }
 0xa63   : > { %v2341_v32 = vsel %vm708_vm5, %v4778_v29, 0.0 }
 0xa65   : > { %v4784_v23 = vpop.eup %3914 }
 0xa66   : > { %v2344_v10 = vsel %vm708_vm5, %v4784_v23, 0.0 }
 0xa7a   : > { %v2325_v16 = vpop.xlane.xlu0 %2324  ;;  %2333 = vadd.xlane.f32.xlu1 %v2332_v25 }
 0xa7b   : > { %3916 = vrcp.f32 %v2325_v16 }
 0xa7e   : > { %2336 = vadd.xlane.f32.xlu0 %v2335_v35  ;;  %2339 = vadd.xlane.f32.xlu1 %v2338_v34 }
 0xa82   : > { %2342 = vadd.xlane.f32.xlu0 %v2341_v32  ;;  %2345 = vadd.xlane.f32.xlu1 %v2344_v10 }
 0xa88   : > { %v3917_v39 = vpop.eup %3916 }
 0xa89   : > { %v2355_v40 = vmul.f32 %v3917_v39, %v3901_v37 }
 0xa8b   : > { %v2363_v11 = vpack.c.bf16 %v2355_v40, %v2355_v40  ;;  %v3856_v40 = vld [vmem:[%s477_s18 + $0x8] sm:$0xff]  }
 0xa8d   : > { %3640 = vmatmul.mubr.msk.bf16.vlgmr.msra.gmra.mxu0 %vm708_vm5, %v2363_v11 }
 0xa8e   : > { %3650 = vmatpush3.bf16.msra.mxu0 %v2476_v42  ;;  %3651 = vmatprep.mubr.msk.bf16.mxu0 %vm4147_vm3, %v4146_v8 }
 0xa8f   : > { %3661 = vmatprep.subr.bf16.mxu0 %v4146_v8 }
 0xa93   : > { %2666 = vrot.lane.b32.xlu1 %v4719_v45, %s4151_s29 }
 0xa98   : > { %2715 = vrot.lane.b32.xlu0 %v4729_v51, %s4151_s29 }
 0xace   : > { %v2328_v43 = vpop.xlane.xlu1 %2327 }
 0xacf   : > { %3918 = vrcp.f32 %v2328_v43 }
 0xad2   : > { %v2331_v46 = vpop.xlane.xlu0 %2330  ;;  %v2569_v38 = vpop.permute.xlu1 %2568 }
 0xad3   : > { %3920 = vrcp.f32 %v2331_v46  ;;  %v2574_v51 = vsel %vm1199_vm6, %v2569_v38, 0  ;;  %v3857_v46 = vld [vmem:[%s477_s18] sm:$0xff]   ;;  %s3098_s18 = sshll.u32 %s4156_s6, 4  ;;  %s3099_s18 = int_to_ptr.vmem [resolvable:$true] %s3098_s18 }
 0xad4   : > { %s4049_s21 = scalar_lea.vmem %s3099_s18, 256  ;;  %p4056_p0 = scmp.lt.s32.totalorder %s3099_s18, %s3099_s18 }
 0xad5   : > { %p4050_p13 = scmp.ne.s32.totalorder %s3099_s18, %s4049_s21  ;;  %p4057_p11 = scmp.lt.s32.totalorder %s4049_s21, %s4049_s21 }
 0xad6   : > { %v2618_v37 = vpop.permute.xlu0 %2617 }
 0xad7   : > { %v2623_v63 = vsel %vm1199_vm6, %v2618_v37, 0  ;;  %p4051_p3 = pnand %p4050_p13, %p3748_p12  ;;  %p4058_p1 = por %p4057_p11, %p4056_p0 }
 0xad9   : > { %p4052_p4 = pneg %p4051_p3 }
 0xadb   : > { %p4059_p5 = pnand %p4058_p1, %p4052_p4 }
 0xadc   : > { %v3919_v47 = vpop.eup %3918 }
 0xadd   : > { %v2356_v48 = vmul.f32 %v3919_v47, %v3903_v19 }
 0xadf   : > { %v2364_v49 = vpack.c.bf16 %v2356_v48, %v2356_v48 }
 0xae0   : > { %v3921_v50 = vpop.eup %3920 }
 0xae1   : > { %3646 = vmatmul.mubr.msk.bf16.vlgmr.msra.gmra.mxu1 %vm708_vm5, %v2364_v49  ;;  %v2357_v54 = vmul.f32 %v3921_v50, %v4765_v33 }
 0xae2   : > { %3656 = vmatpush3.bf16.msra.mxu1 %v2525_v53  ;;  %3657 = vmatprep.mubr.msk.bf16.mxu1 %vm4147_vm3, %v4146_v8 }
 0xae3   : > { %v2365_v45 = vpack.c.bf16 %v2357_v54, %v2357_v54  ;;  %3667 = vmatprep.subr.bf16.mxu1 %v4146_v8 }
 0xae5   : > { %3652 = vmatmul.mubr.msk.bf16.vlgmr.msra.gmra.mxu0 %vm708_vm5, %v2365_v45 }
 0xae6   : > { %3662 = vmatpush3.bf16.msra.mxu0 %v2574_v51  ;;  %3663 = vmatprep.mubr.msk.bf16.mxu0 %vm4147_vm3, %v4146_v8 }
 0xae7   : > { %3673 = vmatprep.subr.bf16.mxu0 %v4146_v8 }
 0xb03   : > { %v2334_v57 = vpop.xlane.xlu1 %2333 }
 0xb04   : > { %3922 = vrcp.f32 %v2334_v57 }
 0xb07   : > { %v2337_v56 = vpop.xlane.xlu0 %2336  ;;  %v2340_v59 = vpop.xlane.xlu1 %2339 }
 0xb08   : > { %3924 = vrcp.f32 %v2337_v56 }
 0xb09   : > { %3926 = vrcp.f32 %v2340_v59 }
 0xb0b   : > { %v2343_v60 = vpop.xlane.xlu0 %2342  ;;  %v2346_v31 = vpop.xlane.xlu1 %2345 }
 0xb0c   : > { %3928 = vrcp.f32 %v2343_v60 }
 0xb0d   : > { %3930 = vrcp.f32 %v2346_v31 }
 0xb0f   : > { %v2667_v58 = vpop.permute.xlu1 %2666  ;;  %v2716_v7 = vpop.permute.xlu0 %2715 }
 0xb10   : > { %v2672_v0 = vsel %vm1199_vm6, %v2667_v58, 0  ;;  %v2721_v20 = vsel %vm1199_vm6, %v2716_v7, 0 }
 0xb11   : > { %v3923_v30 = vpop.eup %3922 }
 0xb12   : > { %v2358_v1 = vmul.f32 %v3923_v30, %v3907_v44 }
 0xb14   : > { %v2366_v19 = vpack.c.bf16 %v2358_v1, %v2358_v1 }
 0xb15   : > { %v3925_v27 = vpop.eup %3924 }
 0xb16   : > { %v3927_v33 = vpop.eup %3926  ;;  %3658 = vmatmul.mubr.msk.bf16.vlgmr.msra.gmra.mxu1 %vm708_vm5, %v2366_v19  ;;  %v2359_v2 = vmul.f32 %v3925_v27, %v4773_v26 }
 0xb17   : > { %3668 = vmatpush3.bf16.msra.mxu1 %v2623_v63  ;;  %3669 = vmatprep.mubr.msk.bf16.mxu1 %vm4147_vm3, %v4146_v8  ;;  %v2360_v4 = vmul.f32 %v3927_v33, %v4776_v28 }
 0xb18   : > { %v2367_v3 = vpack.c.bf16 %v2359_v2, %v2359_v2  ;;  %3679 = vmatprep.subr.bf16.mxu1 %v4146_v8 }
 0xb19   : > { %v3929_v6 = vpop.eup %3928  ;;  %v2368_v5 = vpack.c.bf16 %v2360_v4, %v2360_v4 }
 0xb1a   : > { %3664 = vmatmul.mubr.msk.bf16.vlgmr.msra.gmra.mxu0 %vm708_vm5, %v2367_v3  ;;  %v2361_v9 = vmul.f32 %v3929_v6, %v4778_v29  ;;  %v3931_v17 = vpop.eup %3930 }
 0xb1b   : > { %3674 = vmatpush3.bf16.msra.mxu0 %v2672_v0  ;;  %3675 = vmatprep.mubr.msk.bf16.mxu0 %vm4147_vm3, %v4146_v8  ;;  %v2362_v22 = vmul.f32 %v3931_v17, %v4784_v23 }
 0xb1c   : > { %3685 = vmatprep.subr.bf16.mxu0 %v4146_v8  ;;  %v2369_v21 = vpack.c.bf16 %v2361_v9, %v2361_v9 }
 0xb1d   : > { %v2370_v24 = vpack.c.bf16 %v2362_v22, %v2362_v22  ;;  %v2800_v22 = vsub.s32 6, %v4413_v14 }
 0xb1e   : > { %3670 = vmatmul.mubr.msk.bf16.vlgmr.msra.gmra.mxu1 %vm708_vm5, %v2368_v5 }
 0xb1f   : > { %3680 = vmatpush3.bf16.msra.mxu1 %v2721_v20  ;;  %3681 = vmatprep.mubr.msk.bf16.mxu1 %vm4147_vm3, %v4146_v8 }
 0xb20   : > { %3693 = vmatprep.subr.bf16.mxu1 %v4146_v8 }
 0xb22   : > { %3676 = vmatmul.mubr.msk.bf16.vlgmr.msra.gmra.mxu0 %vm708_vm5, %v2369_v21 }
 0xb23   : > { %3689 = vmatprep.mubr.msk.bf16.mxu0 %vm4147_vm3, %v4146_v8  ;;  %3686 = vmatpush3.bf16.msra.mxu0 %v3856_v40 }
 0xb24   : > { %3687 = vmatprep.subr.bf16.mxu0 %v4146_v8 }
 0xb26   : > { %3682 = vmatmul.mubr.msk.bf16.vlgmr.msra.gmra.mxu1 %vm708_vm5, %v2370_v24  ;;  %v3940_v24 = vld [vmem:[%s4392_s12] sm:$0xff] }
 0xb27   : > { %3697 = vmatprep.mubr.msk.bf16.mxu1 %vm4147_vm3, %v4146_v8  ;;  %3688 = vmatpush3.bf16.msra.mxu0 %v3857_v46 }
 0xb28   : > { %3701 = vmatprep.subr.bf16.mxu0 %v4146_v8 }
 0xb4d   : > { %v2414_v36 = vpop.f32.mrf.mxu0 }
 0xb4f   : > { %v3641_v44 = vpop.f32.mrf.mxu0 }
 0xb51   : > { %v2417_v18 = vpop.f32.mrf.mxu0 }
 0xb53   : > { %v3642_v26 = vpop.f32.mrf.mxu0 }
 0xba1   : > { %v2463_v25 = vpop.f32.mrf.mxu1 }
 0xba3   : > { %v3647_v28 = vpop.f32.mrf.mxu1 }
 0xba5   : > { %v2466_v16 = vpop.f32.mrf.mxu1  ;;  %v2512_v29 = vpop.f32.mrf.mxu0 }
 0xba7   : > { %v3648_v35 = vpop.f32.mrf.mxu1  ;;  %v3653_v34 = vpop.f32.mrf.mxu0 }
 0xba9   : > { %v2515_v23 = vpop.f32.mrf.mxu0 }
 0xbab   : > { %v3654_v32 = vpop.f32.mrf.mxu0 }
 0xbd6   : > { %v2561_v10 = vpop.f32.mrf.mxu1 }
 0xbd8   : > { %v3659_v39 = vpop.f32.mrf.mxu1 }
 0xbda   : > { %v2564_v41 = vpop.f32.mrf.mxu1  ;;  %v2610_v11 = vpop.f32.mrf.mxu0 }
 0xbdc   : > { %v3660_v42 = vpop.f32.mrf.mxu1  ;;  %v3665_v43 = vpop.f32.mrf.mxu0 }
 0xbde   : > { %v2613_v47 = vpop.f32.mrf.mxu0  ;;  %v2659_v48 = vpop.f32.mrf.mxu1 }
 0xbdf   : > { %v3832_v49 = vpack.i.bf16 %v2659_v48, %v2463_v25  ;;  %v3859_v47 = vld [vmem:[%s486_s27] sm:$0xff]   ;;  %v3860_v48 = vld [vmem:[%s4387_s15 + $0x18] sm:$0xff]  }
 0xbe0   : > { %v3666_v50 = vpop.f32.mrf.mxu0  ;;  %v3671_v53 = vpop.f32.mrf.mxu1 }
 0xbe1   : > { %3833 = vrot.lane.b32.xlu1 %v3832_v49, %s4153_s23 }
 0xbe2   : > { %v2662_v54 = vpop.f32.mrf.mxu1  ;;  %v2708_v38 = vpop.f32.mrf.mxu0 }
 0xbe3   : > { %v3837_v45 = vpack.i.bf16 %v2708_v38, %v2512_v29 }
 0xbe4   : > { %v3672_v51 = vpop.f32.mrf.mxu1  ;;  %v3677_v37 = vpop.f32.mrf.mxu0 }
 0xbe5   : > { %3838 = vrot.lane.b32.xlu0 %v3837_v45, %s4154_s20  ;;  %v2888_v51 = vsub.s32 7, %v4413_v14 }
 0xbe6   : > { %v2711_v57 = vpop.f32.mrf.mxu0  ;;  %v2757_v56 = vpop.f32.mrf.mxu1 }
 0xbe7   : > { %v3842_v59 = vpack.i.bf16 %v2757_v56, %v2561_v10  ;;  %v2889_v56 = vrot.slane %v3940_v24, %v2888_v51 }
 0xbe8   : > { %v3678_v60 = vpop.f32.mrf.mxu0  ;;  %v3683_v31 = vpop.f32.mrf.mxu1 }
 0xbe9   : > { %3843 = vrot.lane.b32.xlu1 %v3842_v59, %s4155_s11  ;;  %v4870_v59 = vld [vmem:[%s4392_s12 + $0x8] sm:$0x1f] }
 0xbea   : > { %v2760_v30 = vpop.f32.mrf.mxu1  ;;  %v2895_v31 = vrot.slane %v4870_v59, %v617_v15  ;;  %v2906_v15 = vrot.slane %v4870_v59, %v1618_v13 }
 0xbec   : > { %v3684_v1 = vpop.f32.mrf.mxu1 }
 0xc53   : > { %v3834_v19 = vpop.permute.xlu1 %3833 }
 0xc54   : > { %v3836_v33 = vunpack.i.h.bf16 %v3834_v19  ;;  %v3835_v63 = vunpack.i.l.bf16 %v3834_v19 }
 0xc56   : > { %v2788_v4 = vsel %vm708_vm5, %v2610_v11, %v3836_v33  ;;  %v2787_v6 = vsel %vm708_vm5, %v2414_v36, %v3835_v63  ;;  %v2801_v36 = vrot.slane %v3940_v24, %v2800_v22 }
 0xc57   : > { %v3839_v27 = vpop.permute.xlu0 %3838 }
 0xc58   : > { %v3841_v2 = vunpack.i.h.bf16 %v3839_v27  ;;  %v3840_v58 = vunpack.i.l.bf16 %v3839_v27 }
 0xc5a   : > { %v2789_v5 = vsel %vm1605_vm7, %v2787_v6, %v3840_v58  ;;  %v2790_v9 = vsel %vm1605_vm7, %v2788_v4, %v3841_v2  ;;  %v3861_v2 = vld [vmem:[%s4387_s15 + $0x10] sm:$0xff]   ;;  %v3862_v58 = vld [vmem:[%s4387_s15 + $0x8] sm:$0xff]  }
 0xc5b   : > { %v3844_v3 = vpop.permute.xlu1 %3843 }
 0xc5c   : > { %v3846_v0 = vunpack.i.h.bf16 %v3844_v3  ;;  %v3845_v7 = vunpack.i.l.bf16 %v3844_v3  ;;  %v3863_v3 = vld [vmem:[%s4387_s15] sm:$0xff]  }
 0xc5e   : > { %v2792_v17 = vsel %vm1608_vm8, %v2790_v9, %v3846_v0  ;;  %v2791_v20 = vsel %vm1608_vm8, %v2789_v5, %v3845_v7 }
 0xc5f   : > { %v2793_v21 = vpack.c.bf16 %v2792_v17, %v2791_v20 }
 0xc61   : > { %3690 = vmatmul.mubr.msk.bf16.vlgmr.msra.gmra.mxu0 %vm631_vm4, %v2793_v21 }
 0xc62   : > { %3709 = vmatprep.mubr.msk.bf16.mxu0 %vm4147_vm3, %v4146_v8  ;;  %3702 = vmatpush3.bf16.msra.mxu0 %v3860_v48 }
 0xc63   : > { %3703 = vmatprep.subr.bf16.mxu0 %v4146_v8 }
 0xc66   : > { %3704 = vmatpush3.bf16.msra.mxu0 %v3861_v2 }
 0xc67   : > { %3705 = vmatprep.subr.bf16.mxu0 %v4146_v8 }
 0xc6a   : > { %3706 = vmatpush3.bf16.msra.mxu0 %v3862_v58 }
 0xc6b   : > { %3707 = vmatprep.subr.bf16.mxu0 %v4146_v8 }
 0xc6e   : > { %3708 = vmatpush3.bf16.msra.mxu0 %v3863_v3 }
 0xd21   : > { %v2851_v44 = vpop.f32.mrf.mxu0 }
 0xd22   : > { %v2852_v18 = vadd.f32 %v2851_v44, %v2801_v36 }
 0xd23   : > { %v3691_v26 = vpop.f32.mrf.mxu0 }
 0xd24   : > { %v2858_v25 = vadd.f32 %v2852_v18, %v4660_v61 }
 0xd25   : > { %v2854_v28 = vpop.f32.mrf.mxu0 }
 0xd26   : > { %v2855_v16 = vadd.f32 %v2854_v28, %v2801_v36  ;;  %v2860_v29 = vsel %vm631_vm4, %v2858_v25, 0.0 }
 0xd27   : > { %2861 = vadd.xlane.f32.xlu0 %v2860_v29  ;;  %v3692_v35 = vpop.f32.mrf.mxu0 }
 0xd28   : > { %v2859_v34 = vadd.f32 %v2855_v16, %v4662_v62  ;;  %v3858_v62 = vld [vmem:[%s486_s27 + $0x8] sm:$0xff]  }
 0xd29   : > { %3694 = vmatpush3.bf16.msra.mxu1 %v3858_v62 }
 0xd2a   : > { %v2863_v23 = vsel %vm631_vm4, %v2859_v34, 0.0  ;;  %3695 = vmatprep.subr.bf16.mxu1 %v4146_v8  ;;  %v2977_v8 = vrot.slane %v4870_v59, %v1707_v52 }
 0xd2b   : > { %2864 = vadd.xlane.f32.xlu1 %v2863_v23 }
 0xd2d   : > { %3696 = vmatpush3.bf16.msra.mxu1 %v3859_v47  ;;  %v3078_v47 = vrot.slane %v4870_v59, %v1713_v55 }
 0xdb0   : > { %v2862_v32 = vpop.xlane.xlu0 %2861 }
 0xdb1   : > { %v2866_v10 = vmul.f32 0.03125, %v2862_v32 }
 0xdb3   : > { %v2868_v39 = vsub.f32 %v2858_v25, %v2866_v10 }
 0xdb4   : > { %v2865_v40 = vpop.xlane.xlu1 %2864 }
 0xdb5   : > { %v2867_v41 = vmul.f32 0.03125, %v2865_v40  ;;  %v2870_v61 = vmul.f32 %v2868_v39, %v2868_v39 }
 0xdb7   : > { %v2869_v11 = vsub.f32 %v2859_v34, %v2867_v41  ;;  %v2872_v42 = vsel %vm631_vm4, %v2870_v61, 0.0 }
 0xdb8   : > { %2873 = vadd.xlane.f32.xlu0 %v2872_v42 }
 0xdb9   : > { %v2871_v43 = vmul.f32 %v2869_v11, %v2869_v11 }
 0xdbb   : > { %v2875_v46 = vsel %vm631_vm4, %v2871_v43, 0.0 }
 0xdbc   : > { %2876 = vadd.xlane.f32.xlu0 %v2875_v46 }
 0xe41   : > { %v2874_v49 = vpop.xlane.xlu0 %2873 }
 0xe42   : > { %v2878_v50 = vmul.f32 0.03125, %v2874_v49  ;;  %v3084_v49 = vrot.slane %v4870_v59, %v1724_v12 }
 0xe44   : > { %v2880_v53 = vadd.f32 1e-05, %v2878_v50 }
 0xe45   : > { %v2877_v54 = vpop.xlane.xlu0 %2876 }
 0xe46   : > { %3932 = vrsqrt.f32 %v2880_v53  ;;  %v2879_v38 = vmul.f32 0.03125, %v2877_v54 }
 0xe48   : > { %v2881_v45 = vadd.f32 1e-05, %v2879_v38 }
 0xe4a   : > { %3934 = vrsqrt.f32 %v2881_v45 }
 0xe53   : > { %v3933_v37 = vpop.eup %3932 }
 0xe54   : > { %v2884_v57 = vmul.f32 %v3933_v37, %v2868_v39 }
 0xe56   : > { %v2890_v1 = vmul.f32 %v2889_v56, %v2884_v57 }
 0xe57   : > { %v3935_v60 = vpop.eup %3934 }
 0xe58   : > { %v2885_v30 = vmul.f32 %v3935_v60, %v2869_v11  ;;  %v2896_v27 = vadd.f32 %v2895_v31, %v2890_v1 }
 0xe5a   : > { %v2891_v19 = vmul.f32 %v2889_v56, %v2885_v30 }
 0xe5c   : > { %v2897_v33 = vadd.f32 %v2895_v31, %v2891_v19 }
 0xe5e   : > { %v2898_v63 = vpack.c.bf16 %v2897_v33, %v2896_v27 }
 0xe60   : > { %3698 = vmatmul.mubr.msk.bf16.vlgmr.msra.gmra.mxu1 %vm631_vm4, %v2898_v63 }
 0xf20   : > { %v2956_v4 = vpop.f32.mrf.mxu1 }
 0xf21   : > { %v2957_v0 = vadd.f32 %v2956_v4, %v2906_v15 }
 0xf22   : > { %v3699_v6 = vpop.f32.mrf.mxu1 }
 0xf23   : > { %v2963_v17 = vmax.f32 %v2957_v0, 0.0 }
 0xf24   : > { %v2959_v7 = vpop.f32.mrf.mxu1 }
 0xf25   : > { %v2960_v5 = vadd.f32 %v2959_v7, %v2906_v15 }
 0xf26   : > { %v3700_v9 = vpop.f32.mrf.mxu1 }
 0xf27   : > { %v2964_v20 = vmax.f32 %v2960_v5, 0.0 }
 0xf29   : > { %v2965_v21 = vpack.c.bf16 %v2964_v20, %v2963_v17 }
 0xf2b   : > { %3710 = vmatmul.mubr.msk.bf16.vlgmr.msra.gmra.mxu0 %vm3002_vm9, %v2965_v21 }
 0xfeb   : > { %v3040_v22 = vpop.f32.mrf.mxu0 }
 0xfec   : > { %v3041_v24 = vadd.f32 %v3040_v22, %v2977_v8 }
 0xfed   : > { %v3711_v36 = vpop.f32.mrf.mxu0 }
 0xfee   : > { %v3047_v44 = vadd.f32 %v3041_v24, %v2896_v27 }
 0xfef   : > { %v3043_v13 = vpop.f32.mrf.mxu0 }
 0xff0   : > { %v3044_v18 = vadd.f32 %v3043_v13, %v2977_v8  ;;  %v3049_v26 = vsel %vm631_vm4, %v3047_v44, 0.0 }
 0xff1   : > { %3050 = vadd.xlane.f32.xlu1 %v3049_v26  ;;  %v3712_v25 = vpop.f32.mrf.mxu0 }
 0xff2   : > { %v3048_v28 = vadd.f32 %v3044_v18, %v2897_v33 }
 0xff4   : > { %v3052_v16 = vsel %vm631_vm4, %v3048_v28, 0.0 }
 0xff5   : > { %3053 = vadd.xlane.f32.xlu0 %v3052_v16 }
0x107a   : > { %v3051_v29 = vpop.xlane.xlu1 %3050 }
0x107b   : > { %v3055_v35 = vmul.f32 0.03125, %v3051_v29 }
0x107d   : > { %v3057_v34 = vsub.f32 %v3047_v44, %v3055_v35 }
0x107e   : > { %v3054_v23 = vpop.xlane.xlu0 %3053 }
0x107f   : > { %v3056_v32 = vmul.f32 0.03125, %v3054_v23  ;;  %v3059_v52 = vmul.f32 %v3057_v34, %v3057_v34 }
0x1081   : > { %v3058_v10 = vsub.f32 %v3048_v28, %v3056_v32  ;;  %v3061_v39 = vsel %vm631_vm4, %v3059_v52, 0.0 }
0x1082   : > { %3062 = vadd.xlane.f32.xlu1 %v3061_v39 }
0x1083   : > { %v3060_v40 = vmul.f32 %v3058_v10, %v3058_v10 }
0x1085   : > { %v3064_v41 = vsel %vm631_vm4, %v3060_v40, 0.0 }
0x1086   : > { %3065 = vadd.xlane.f32.xlu0 %v3064_v41 }
0x110b   : > { %v3063_v61 = vpop.xlane.xlu1 %3062 }
0x110c   : > { %v3067_v11 = vmul.f32 0.03125, %v3063_v61 }
0x110e   : > { %v3069_v42 = vadd.f32 1e-05, %v3067_v11 }
0x110f   : > { %v3066_v43 = vpop.xlane.xlu0 %3065 }
0x1110   : > { %3936 = vrsqrt.f32 %v3069_v42  ;;  %v3068_v46 = vmul.f32 0.03125, %v3066_v43 }
0x1112   : > { %v3070_v62 = vadd.f32 1e-05, %v3068_v46 }
0x1114   : > { %3938 = vrsqrt.f32 %v3070_v62 }
0x111d   : > { %v3937_v48 = vpop.eup %3936 }
0x111e   : > { %v3073_v50 = vmul.f32 %v3937_v48, %v3057_v34 }
0x1120   : > { %v3079_v53 = vmul.f32 %v3078_v47, %v3073_v50 }
0x1121   : > { %v3939_v54 = vpop.eup %3938 }
0x1122   : > { %v3074_v38 = vmul.f32 %v3939_v54, %v3058_v10  ;;  %v3085_v45 = vadd.f32 %v3084_v49, %v3079_v53 }
0x1124   : > { %v3080_v51 = vmul.f32 %v3078_v47, %v3074_v38  ;;  %3087 = vst.msk [vmem:[#allocation10] sm:$0xff] %vm631_vm4, %v3085_v45 }
0x1126   : > { %v3086_v37 = vadd.f32 %v3084_v49, %v3080_v51 }
0x1128   : > { %3088 = vst.msk [vmem:[#allocation10 + $0x8] sm:$0xff] %vm631_vm4, %v3086_v37 }
0x1129   : > { %4062 = shalt.err (!%p4059_p5)
}
0x112a   : > { %s4157_s8 = smov 128   ;;  %s4977_s25 = sld [smem:[#allocation24_spill]] }
0x1130   : > { %3726 = dma.vmem_to_hbm [thread:$0]  (%p3748_p12), %s3099_s18, 256, %s4977_s25, [#allocation5], %s4157_s8, %s4157_s8, %s4153_s23  }
0x1131   : > { %4110 = dma.done.wait (%p3748_p12), [#allocation5], 256  }
0x1132   : > { %4112 = vsyncadd (%p3748_p12), [#allocation5], 4294967040 }
0x1133 PF: > { %s4978_s5 = sld [smem:[#allocation16_spill]]  ;;  %s4982_s13 = smov %s4119_s14 }
0x1134   : > { %s4979_s0 = sld [smem:[#allocation15_spill]]  ;;  %s4984_s16 = smov %s4131_s17 }
0x1135   : > { %s4980_s15 = sld [smem:[#allocation18_spill]] }
0x1136   : > { %s4981_s22 = sld [smem:[#allocation17_spill]] }
0x1139   : > { %s23_s18 = sadd.s32 1, %s4978_s5  }
0x113a   : > { %p20_p10 = scmp.ge.s32.totalorder %s23_s18, 4   ;;  %s4983_s14 = smov %s4979_s0 }
0x113c   : > { %s4985_s17 = smov %s4981_s22  ;;  %22 = sbr.rel (!%p20_p10) target bundleno = 12 (0xc), region = 140 }
0x1141   :  { %3114 = vsyncpa [#allocation4], 1 }
0x1142   :  { %3116 = vsyncpa [#allocation4 + $0x1], 1 }
0x1143   :  { %3117 = vsyncpa [#allocation7], 1 }
0x1144   :  { %3118 = vsyncpa [#allocation5], 1 }
0x1145   :  { %3120 = vsyncpa [#allocation5 + $0x1], 1 }

</bundles_post_ra>
